<compile_context>
chip_gen: v5e
topology: v5e:2x2
jax: 0.10.0
libtpu: 0.0.40
codegen_flags: <defaults>
</compile_context>

<pallas_src>
import jax
import jax.numpy as jnp
from jax.experimental import pallas as pl
from jax.experimental.pallas import tpu as pltpu

F32 = jnp.float32
BF16 = jnp.bfloat16


# ------------------------------ fused MLP kernel ------------------------------
def mlp_kernel(x_ref, w1_ref, b1_ref, w2_ref, b2_ref, w3_ref, b3_ref,
               w4_ref, b4_ref, w5_ref, b5_ref, o_ref):
    # Weights arrive already bf16; activations are cast to bf16 only at the MXU
    # boundary, all accumulation / bias / tanh math stays f32.
    x = x_ref[...].astype(BF16)                                     # [tb, 28]
    h = jnp.tanh(jnp.dot(x, w1_ref[...],
                         preferred_element_type=F32) + b1_ref[...])
    # TODO(synk): dropout(p=0.5) is identity at inference; training-mode dropout
    # (pltpu.prng_seed / prng_random_bits masking) not implemented.
    h = jnp.tanh(jnp.dot(h.astype(BF16), w2_ref[...],
                         preferred_element_type=F32) + b2_ref[...])
    h = jnp.tanh(jnp.dot(h.astype(BF16), w3_ref[...],
                         preferred_element_type=F32) + b3_ref[...])
    h = jnp.tanh(jnp.dot(h.astype(BF16), w4_ref[...],
                         preferred_element_type=F32) + b4_ref[...])
    # Final layer: [tb, 300] @ [300, 1] -> [tb, 1].
    o_ref[...] = jnp.dot(h.astype(BF16), w5_ref[...],
                         preferred_element_type=F32) + b5_ref[...]


# --------------------------------- tiling policy --------------------------------
def _round_up(n, m):
    return ((n + m - 1) // m) * m


def _choose_tile(B, tb_max=512):
    """Batch-tile size.

    - B <= 256: one tile (splitting tiny batches only adds grid-step overhead).
    - 256 < B <= 1024: two tiles, so v7x's second TensorCore gets work.
    - larger: 512-row tiles (fills the MXU M dim on every generation; resident
      weights + [512, 384] f32 intermediates stay well under v5e's 16 MiB
      scoped-VMEM default).
    """
    if B <= 256:
        return _round_up(B, 8)
    if B <= 2 * tb_max:
        return _round_up(pl.cdiv(B, 2), 8)
    return tb_max


# --------------------------------- wrapper -------------------------------------
def mlp_forward(params, x):
    """Fused forward pass. x: [B, 28] float32 -> [B, 1] float32."""
    B, fin = x.shape
    tb = _choose_tile(B)
    num_tiles = pl.cdiv(B, tb)
    Bp = num_tiles * tb
    # No jnp.pad: a ragged last x-block reads unspecified rows, which only feed
    # output rows in [B, Bp) that are sliced off below (rows are independent).

    # Weights -> bf16 once in the wrapper (halves weight DMA, native MXU dtype);
    # biases stay f32 for the f32 bias-add/tanh path.
    flat = [params["w1"].astype(BF16), params["b1"],
            params["w2"].astype(BF16), params["b2"],
            params["w3"].astype(BF16), params["b3"],
            params["w4"].astype(BF16), params["b4"],
            params["w5"].astype(BF16), params["b5"]]

    # Batch tiles stream through the grid; weights/biases use a constant
    # index_map so they stay resident in VMEM across grid steps.
    in_specs = [pl.BlockSpec((tb, fin), lambda i: (i, 0))]
    for arr in flat:
        r, c = arr.shape
        in_specs.append(pl.BlockSpec((r, c), lambda i: (0, 0)))

    out = pl.pallas_call(
        mlp_kernel,
        out_shape=jax.ShapeDtypeStruct((Bp, 1), F32),
        grid=(num_tiles,),
        in_specs=in_specs,
        out_specs=pl.BlockSpec((tb, 1), lambda i: (i, 0)),
        compiler_params=pltpu.CompilerParams(
            dimension_semantics=("parallel",),      # shard batch tiles on v7x
            vmem_limit_bytes=32 * 1024 * 1024),     # headroom over v5e's 16 MiB default
    )(x, *flat)

    return out[:B] if Bp != B else out


# ----------------------------- params (matches spec) ---------------------------
def init_params(key):
    ks = jax.random.split(key, 10)

    def linear(kw, kb, fin, fout, std):
        w = std * jax.random.normal(kw, (fin, fout), F32)   # init.normal_(std=std)
        bound = 1.0 / (fin ** 0.5)                          # nn.Linear default bias
        b = jax.random.uniform(kb, (1, fout), F32, -bound, bound)
        return w, b

    w1, b1 = linear(ks[0], ks[1], 28, 300, 0.1)
    w2, b2 = linear(ks[2], ks[3], 300, 300, 0.05)
    w3, b3 = linear(ks[4], ks[5], 300, 300, 0.05)
    w4, b4 = linear(ks[6], ks[7], 300, 300, 0.05)
    w5, b5 = linear(ks[8], ks[9], 300, 1, 0.001)
    return dict(w1=w1, b1=b1, w2=w2, b2=b2, w3=w3, b3=b3,
                w4=w4, b4=b4, w5=w5, b5=b5)


# ---------------------------------- reference -----------------------------------
def mlp_reference(p, x):
    h = jnp.tanh(x @ p["w1"] + p["b1"])
    h = jnp.tanh(h @ p["w2"] + p["b2"])
    h = jnp.tanh(h @ p["w3"] + p["b3"])
    h = jnp.tanh(h @ p["w4"] + p["b4"])
    return h @ p["w5"] + p["b5"]


if __name__ == "__main__":
    key = jax.random.PRNGKey(0)
    kx, kp = jax.random.split(key)

    B = 16
    x = jax.random.normal(kx, (B, 28), F32)
    params = init_params(kp)

    fwd = jax.jit(mlp_forward)
    out = jax.block_until_ready(fwd(params, x))

    assert out.shape == (B, 1) and out.dtype == F32
    assert bool(jnp.all(jnp.isfinite(out)))

    ref = mlp_reference(params, x)
    # bf16 MXU inputs lose ~3 decimal digits per layer; well within this band.
    assert bool(jnp.allclose(out, ref, rtol=5e-2, atol=2e-3))

    print("KERNEL_OK")
</pallas_src>

<mosaic_0001>
module attributes {stable_mosaic.version = 11 : i64} {
  func.func @mlp_kernel(%arg0: i32, %arg1: memref<16x28xf32, #tpu.memory_space<vmem>>, %arg2: memref<28x300xbf16, #tpu.memory_space<vmem>>, %arg3: memref<1x300xf32, #tpu.memory_space<vmem>>, %arg4: memref<300x300xbf16, #tpu.memory_space<vmem>>, %arg5: memref<1x300xf32, #tpu.memory_space<vmem>>, %arg6: memref<300x300xbf16, #tpu.memory_space<vmem>>, %arg7: memref<1x300xf32, #tpu.memory_space<vmem>>, %arg8: memref<300x300xbf16, #tpu.memory_space<vmem>>, %arg9: memref<1x300xf32, #tpu.memory_space<vmem>>, %arg10: memref<300x1xbf16, #tpu.memory_space<vmem>>, %arg11: memref<1x1xf32, #tpu.memory_space<vmem>>, %arg12: memref<16x1xf32, #tpu.memory_space<vmem>>) attributes {dimension_semantics = [#tpu.dimension_semantics<parallel>], iteration_bounds = array<i64: 1>, scalar_prefetch = 0 : i64, scratch_operands = 0 : i64, tpu.core_type = #tpu.core_type<tc>, window_params = [{transform_indices = @transform_0, window_bounds = array<i64: 16, 28>}, {pipeline_mode = #tpu.pipeline_mode<synchronous>, transform_indices = @transform_1, window_bounds = array<i64: 28, 300>}, {pipeline_mode = #tpu.pipeline_mode<synchronous>, transform_indices = @transform_2, window_bounds = array<i64: 1, 300>}, {pipeline_mode = #tpu.pipeline_mode<synchronous>, transform_indices = @transform_3, window_bounds = array<i64: 300, 300>}, {pipeline_mode = #tpu.pipeline_mode<synchronous>, transform_indices = @transform_4, window_bounds = array<i64: 1, 300>}, {pipeline_mode = #tpu.pipeline_mode<synchronous>, transform_indices = @transform_5, window_bounds = array<i64: 300, 300>}, {pipeline_mode = #tpu.pipeline_mode<synchronous>, transform_indices = @transform_6, window_bounds = array<i64: 1, 300>}, {pipeline_mode = #tpu.pipeline_mode<synchronous>, transform_indices = @transform_7, window_bounds = array<i64: 300, 300>}, {pipeline_mode = #tpu.pipeline_mode<synchronous>, transform_indices = @transform_8, window_bounds = array<i64: 1, 300>}, {pipeline_mode = #tpu.pipeline_mode<synchronous>, transform_indices = @transform_9, window_bounds = array<i64: 300, 1>}, {pipeline_mode = #tpu.pipeline_mode<synchronous>, transform_indices = @transform_10, window_bounds = array<i64: 1, 1>}, {transform_indices = @transform_11, window_bounds = array<i64: 16, 1>}]} {
    %c0 = arith.constant 0 : index
    %c0_0 = arith.constant 0 : index
    %0 = vector.load %arg1[%c0, %c0_0] : memref<16x28xf32, #tpu.memory_space<vmem>>, vector<16x28xf32>
    %1 = arith.truncf %0 : vector<16x28xf32> to vector<16x28xbf16>
    %c0_1 = arith.constant 0 : index
    %c0_2 = arith.constant 0 : index
    %2 = vector.load %arg2[%c0_1, %c0_2] : memref<28x300xbf16, #tpu.memory_space<vmem>>, vector<28x300xbf16>
    %cst = arith.constant dense<0.000000e+00> : vector<16x300xf32>
    %3 = tpu.matmul %1, %2, %cst {dimension_numbers = #tpu.dot_dimension_numbers<[1], [0], [0], [1], [0, 0, 1, 1], [], []>} : vector<16x28xbf16>, vector<28x300xbf16>, vector<16x300xf32> -> vector<16x300xf32>
    %c0_3 = arith.constant 0 : index
    %c0_4 = arith.constant 0 : index
    %4 = vector.load %arg3[%c0_3, %c0_4] : memref<1x300xf32, #tpu.memory_space<vmem>>, vector<1x300xf32>
    %5 = vector.broadcast %4 : vector<1x300xf32> to vector<16x300xf32>
    %6 = arith.addf %3, %5 : vector<16x300xf32>
    %7 = math.tanh %6 : vector<16x300xf32>
    %8 = arith.truncf %7 : vector<16x300xf32> to vector<16x300xbf16>
    %c0_5 = arith.constant 0 : index
    %c0_6 = arith.constant 0 : index
    %9 = vector.load %arg4[%c0_5, %c0_6] : memref<300x300xbf16, #tpu.memory_space<vmem>>, vector<300x300xbf16>
    %cst_7 = arith.constant dense<0.000000e+00> : vector<16x300xf32>
    %10 = tpu.matmul %8, %9, %cst_7 {dimension_numbers = #tpu.dot_dimension_numbers<[1], [0], [0], [1], [0, 0, 1, 1], [], []>} : vector<16x300xbf16>, vector<300x300xbf16>, vector<16x300xf32> -> vector<16x300xf32>
    %c0_8 = arith.constant 0 : index
    %c0_9 = arith.constant 0 : index
    %11 = vector.load %arg5[%c0_8, %c0_9] : memref<1x300xf32, #tpu.memory_space<vmem>>, vector<1x300xf32>
    %12 = vector.broadcast %11 : vector<1x300xf32> to vector<16x300xf32>
    %13 = arith.addf %10, %12 : vector<16x300xf32>
    %14 = math.tanh %13 : vector<16x300xf32>
    %15 = arith.truncf %14 : vector<16x300xf32> to vector<16x300xbf16>
    %c0_10 = arith.constant 0 : index
    %c0_11 = arith.constant 0 : index
    %16 = vector.load %arg6[%c0_10, %c0_11] : memref<300x300xbf16, #tpu.memory_space<vmem>>, vector<300x300xbf16>
    %cst_12 = arith.constant dense<0.000000e+00> : vector<16x300xf32>
    %17 = tpu.matmul %15, %16, %cst_12 {dimension_numbers = #tpu.dot_dimension_numbers<[1], [0], [0], [1], [0, 0, 1, 1], [], []>} : vector<16x300xbf16>, vector<300x300xbf16>, vector<16x300xf32> -> vector<16x300xf32>
    %c0_13 = arith.constant 0 : index
    %c0_14 = arith.constant 0 : index
    %18 = vector.load %arg7[%c0_13, %c0_14] : memref<1x300xf32, #tpu.memory_space<vmem>>, vector<1x300xf32>
    %19 = vector.broadcast %18 : vector<1x300xf32> to vector<16x300xf32>
    %20 = arith.addf %17, %19 : vector<16x300xf32>
    %21 = math.tanh %20 : vector<16x300xf32>
    %22 = arith.truncf %21 : vector<16x300xf32> to vector<16x300xbf16>
    %c0_15 = arith.constant 0 : index
    %c0_16 = arith.constant 0 : index
    %23 = vector.load %arg8[%c0_15, %c0_16] : memref<300x300xbf16, #tpu.memory_space<vmem>>, vector<300x300xbf16>
    %cst_17 = arith.constant dense<0.000000e+00> : vector<16x300xf32>
    %24 = tpu.matmul %22, %23, %cst_17 {dimension_numbers = #tpu.dot_dimension_numbers<[1], [0], [0], [1], [0, 0, 1, 1], [], []>} : vector<16x300xbf16>, vector<300x300xbf16>, vector<16x300xf32> -> vector<16x300xf32>
    %c0_18 = arith.constant 0 : index
    %c0_19 = arith.constant 0 : index
    %25 = vector.load %arg9[%c0_18, %c0_19] : memref<1x300xf32, #tpu.memory_space<vmem>>, vector<1x300xf32>
    %26 = vector.broadcast %25 : vector<1x300xf32> to vector<16x300xf32>
    %27 = arith.addf %24, %26 : vector<16x300xf32>
    %28 = math.tanh %27 : vector<16x300xf32>
    %29 = arith.truncf %28 : vector<16x300xf32> to vector<16x300xbf16>
    %c0_20 = arith.constant 0 : index
    %c0_21 = arith.constant 0 : index
    %30 = vector.load %arg10[%c0_20, %c0_21] : memref<300x1xbf16, #tpu.memory_space<vmem>>, vector<300x1xbf16>
    %cst_22 = arith.constant dense<0.000000e+00> : vector<16x1xf32>
    %31 = tpu.matmul %29, %30, %cst_22 {dimension_numbers = #tpu.dot_dimension_numbers<[1], [0], [0], [1], [0, 0, 1, 1], [], []>} : vector<16x300xbf16>, vector<300x1xbf16>, vector<16x1xf32> -> vector<16x1xf32>
    %c0_23 = arith.constant 0 : index
    %c0_24 = arith.constant 0 : index
    %32 = vector.load %arg11[%c0_23, %c0_24] : memref<1x1xf32, #tpu.memory_space<vmem>>, vector<1x1xf32>
    %33 = vector.broadcast %32 : vector<1x1xf32> to vector<16x1xf32>
    %34 = arith.addf %31, %33 : vector<16x1xf32>
    %c0_25 = arith.constant 0 : index
    %c0_26 = arith.constant 0 : index
    %35 = vector.load %arg12[%c0_25, %c0_26] : memref<16x1xf32, #tpu.memory_space<vmem>>, vector<16x1xf32>
    tpu.vector_store %arg12[%c0_25, %c0_26], %34 {strides = array<i32>} : memref<16x1xf32, #tpu.memory_space<vmem>>, vector<16x1xf32>,
    return
  }
  func.func @transform_0(%arg0: i32) -> (i32, i32) {
    %c0_i32 = arith.constant 0 : i32
    %c0_i32_0 = arith.constant 0 : i32
    return %arg0, %c0_i32 : i32, i32
  }
  func.func @transform_1(%arg0: i32) -> (i32, i32) {
    %c0_i32 = arith.constant 0 : i32
    %c0_i32_0 = arith.constant 0 : i32
    %c0_i32_1 = arith.constant 0 : i32
    return %c0_i32, %c0_i32_0 : i32, i32
  }
  func.func @transform_2(%arg0: i32) -> (i32, i32) {
    %c0_i32 = arith.constant 0 : i32
    %c0_i32_0 = arith.constant 0 : i32
    %c0_i32_1 = arith.constant 0 : i32
    return %c0_i32, %c0_i32_0 : i32, i32
  }
  func.func @transform_3(%arg0: i32) -> (i32, i32) {
    %c0_i32 = arith.constant 0 : i32
    %c0_i32_0 = arith.constant 0 : i32
    %c0_i32_1 = arith.constant 0 : i32
    return %c0_i32, %c0_i32_0 : i32, i32
  }
  func.func @transform_4(%arg0: i32) -> (i32, i32) {
    %c0_i32 = arith.constant 0 : i32
    %c0_i32_0 = arith.constant 0 : i32
    %c0_i32_1 = arith.constant 0 : i32
    return %c0_i32, %c0_i32_0 : i32, i32
  }
  func.func @transform_5(%arg0: i32) -> (i32, i32) {
    %c0_i32 = arith.constant 0 : i32
    %c0_i32_0 = arith.constant 0 : i32
    %c0_i32_1 = arith.constant 0 : i32
    return %c0_i32, %c0_i32_0 : i32, i32
  }
  func.func @transform_6(%arg0: i32) -> (i32, i32) {
    %c0_i32 = arith.constant 0 : i32
    %c0_i32_0 = arith.constant 0 : i32
    %c0_i32_1 = arith.constant 0 : i32
    return %c0_i32, %c0_i32_0 : i32, i32
  }
  func.func @transform_7(%arg0: i32) -> (i32, i32) {
    %c0_i32 = arith.constant 0 : i32
    %c0_i32_0 = arith.constant 0 : i32
    %c0_i32_1 = arith.constant 0 : i32
    return %c0_i32, %c0_i32_0 : i32, i32
  }
  func.func @transform_8(%arg0: i32) -> (i32, i32) {
    %c0_i32 = arith.constant 0 : i32
    %c0_i32_0 = arith.constant 0 : i32
    %c0_i32_1 = arith.constant 0 : i32
    return %c0_i32, %c0_i32_0 : i32, i32
  }
  func.func @transform_9(%arg0: i32) -> (i32, i32) {
    %c0_i32 = arith.constant 0 : i32
    %c0_i32_0 = arith.constant 0 : i32
    %c0_i32_1 = arith.constant 0 : i32
    return %c0_i32, %c0_i32_0 : i32, i32
  }
  func.func @transform_10(%arg0: i32) -> (i32, i32) {
    %c0_i32 = arith.constant 0 : i32
    %c0_i32_0 = arith.constant 0 : i32
    %c0_i32_1 = arith.constant 0 : i32
    return %c0_i32, %c0_i32_0 : i32, i32
  }
  func.func @transform_11(%arg0: i32) -> (i32, i32) {
    %c0_i32 = arith.constant 0 : i32
    %c0_i32_0 = arith.constant 0 : i32
    return %arg0, %c0_i32 : i32, i32
  }
}

</mosaic_0001>

<bundles_post_ra>
// kernel: mlp_forward.1
= control target key start
LH: loop header
LB: loop body
LE: loop exit
PB: predicated region body
PF: predicated region fallthrough
CT: control target
= control target key end

     0   :  { %vm93_vm0 = vcmask 1045504   ;;  %vm89_vm1 = vcmask 228352   ;;  %vm539_vm2 = vcmask 359424   ;;  %vm1954_vm3 = vcmask 7168   ;;  %s4270_s1 = inlined_call_operand.vmem [shape: bf16[28,300], index: 1, kind: input, shape index: {}]   ;;  %s4271_s0 = inlined_call_operand.vmem [shape: f32[16,28], index: 0, kind: input, shape index: {}]   ;;  %s4272_s3 = inlined_call_operand.vmem [shape: bf16[300,300], index: 3, kind: input, shape index: {}]   ;;  %s4273_s2 = inlined_call_operand.vmem [shape: f32[1,300], index: 2, kind: input, shape index: {}]   ;;  %s4274_s5 = inlined_call_operand.vmem [shape: bf16[300,300], index: 5, kind: input, shape index: {}]   ;;  %s4275_s4 = inlined_call_operand.vmem [shape: f32[1,300], index: 4, kind: input, shape index: {}]   ;;  %s4276_s7 = inlined_call_operand.vmem [shape: bf16[300,300], index: 7, kind: input, shape index: {}]   ;;  %s4277_s6 = inlined_call_operand.vmem [shape: f32[1,300], index: 6, kind: input, shape index: {}]   ;;  %s4278_s9 = inlined_call_operand.vmem [shape: bf16[300,1], index: 9, kind: input, shape index: {}]   ;;  %s4279_s8 = inlined_call_operand.vmem [shape: f32[1,300], index: 8, kind: input, shape index: {}]   ;;  %s4280_s10 = inlined_call_operand.<no memory space> [shape: f32[1,1], index: 10, kind: input, shape index: {}]   ;;  %s4281_s11 = inlined_call_operand.vmem [shape: f32[16,1], index: 11, kind: output, shape index: {}]  }
   0x1   :  { %v1975_v0 = vld [vmem:[%s4270_s1 + $0x18] sm:$0xf]  ;;  %v2762_v1 = vld [vmem:[%s4270_s1 + $0x20] sm:$0x30]  ;;  %v2761_v2 = vld [vmem:[%s4270_s1 + $0x1c] sm:$0xf] }
   0x2   :  { %v1976_v3 = vor.u32 %v2762_v1, %v1975_v0  ;;  %v1977_v4 = vld [vmem:[%s4270_s1 + $0x24] sm:$0x30]  ;;  %v1983_v5 = vld [vmem:[%s4270_s1 + $0x20] sm:$0xf]  ;;  %v2763_v6 = vld [vmem:[%s4270_s1 + $0x28] sm:$0x30] }
   0x3   :  { %v1980_v7 = vor.u32 %v2761_v2, %v1977_v4  ;;  %v1984_v8 = vor.u32 %v2763_v6, %v1983_v5  ;;  %v1963_v9 = vld [vmem:[%s4270_s1] sm:$0xf]  ;;  %v2759_v10 = vld [vmem:[%s4270_s1 + $0x8] sm:$0xf0]  ;;  %v2758_v11 = vld [vmem:[%s4270_s1 + $0x4] sm:$0xf] }
   0x4   :  { %v95_v12 = vsel %vm93_vm0, %v1976_v3, 0  ;;  %v1965_v13 = vld [vmem:[%s4270_s1 + $0xc] sm:$0xf0]  ;;  %v1971_v14 = vld [vmem:[%s4270_s1 + $0x8] sm:$0xf]  ;;  %v1964_v17 = vor.u32 %v2759_v10, %v1963_v9  ;;  %v41_v19 = vld [vmem:[%s4271_s0] sm:$0xff] }
   0x5   :  { %109 = vmatpush.bf16.msra.mxu0 %v95_v12  ;;  %v98_v15 = vsel %vm93_vm0, %v1980_v7, 0  ;;  %v101_v16 = vsel %vm93_vm0, %v1984_v8, 0  ;;  %v2760_v18 = vld [vmem:[%s4270_s1 + $0x10] sm:$0xf0]  ;;  %v42_v20 = vld [vmem:[%s4271_s0 + $0x8] sm:$0xff]  ;;  %v1968_v21 = vor.u32 %v2758_v11, %v1965_v13 }
   0x6   :  { %123 = vmatpush.bf16.msra.mxu1 %v98_v15  ;;  %137 = vmatpush.bf16.msra.mxu2 %v101_v16  ;;  %v1972_v22 = vor.u32 %v2760_v18, %v1971_v14  ;;  %v2170_v23 = vld [vmem:[%s4272_s3 + $0x168] sm:$0xf]  ;;  %v2810_v24 = vld [vmem:[%s4272_s3 + $0x170] sm:$0xf0]  ;;  %v2785_v25 = vld [vmem:[%s4272_s3 + $0xac] sm:$0xf]  ;;  %v43_v29 = vpack.c.bf16 %v42_v20, %v41_v19 }
   0x7   :  { %v2171_v26 = vor.u32 %v2810_v24, %v2170_v23  ;;  %v2076_v27 = vld [vmem:[%s4272_s3 + $0xb4] sm:$0xf0]  ;;  %v2158_v28 = vld [vmem:[%s4272_s3 + $0x150] sm:$0xf]  ;;  %v2807_v31 = vld [vmem:[%s4272_s3 + $0x158] sm:$0xf0] }
   0x8   :  { %v2079_v30 = vor.u32 %v2785_v25, %v2076_v27  ;;  %v2782_v32 = vld [vmem:[%s4272_s3 + $0x94] sm:$0xf]  ;;  %v2064_v33 = vld [vmem:[%s4272_s3 + $0x9c] sm:$0xf0]  ;;  %v2159_v34 = vor.u32 %v2807_v31, %v2158_v28  ;;  %v2146_v36 = vld [vmem:[%s4272_s3 + $0x138] sm:$0xf] }
   0x9   :  { %110 = vmatpush.bf16.msra.mxu0 %v1964_v17  ;;  %v2067_v35 = vor.u32 %v2782_v32, %v2064_v33  ;;  %v2074_v37 = vld [vmem:[%s4272_s3 + $0xa8] sm:$0xf]  ;;  %v2786_v38 = vld [vmem:[%s4272_s3 + $0xb0] sm:$0xf0]  ;;  %v2804_v39 = vld [vmem:[%s4272_s3 + $0x140] sm:$0xf0] }
   0xa   :  { %124 = vmatpush.bf16.msra.mxu1 %v1968_v21  ;;  %138 = vmatpush.bf16.msra.mxu2 %v1972_v22  ;;  %v2779_v40 = vld [vmem:[%s4272_s3 + $0x7c] sm:$0xf]  ;;  %v2052_v41 = vld [vmem:[%s4272_s3 + $0x84] sm:$0xf0]  ;;  %v2075_v42 = vor.u32 %v2786_v38, %v2074_v37  ;;  %v2062_v43 = vld [vmem:[%s4272_s3 + $0x90] sm:$0xf]  ;;  %v2147_v46 = vor.u32 %v2804_v39, %v2146_v36 }
   0xb   :  { %v2783_v44 = vld [vmem:[%s4272_s3 + $0x98] sm:$0xf0]  ;;  %v2055_v47 = vor.u32 %v2779_v40, %v2052_v41  ;;  %v2134_v48 = vld [vmem:[%s4272_s3 + $0x120] sm:$0xf]  ;;  %v2050_v49 = vld [vmem:[%s4272_s3 + $0x78] sm:$0xf] }
   0xc   :  { %1985 = vmatmul.msk.bf16.vlgmr.msra.gmra.mxu0 %vm89_vm1, %v43_v29  ;;  %552 = vmatpush.bf16.msra.mxu3 %v2075_v42  ;;  %v2063_v45 = vor.u32 %v2783_v44, %v2062_v43  ;;  %v2780_v50 = vld [vmem:[%s4272_s3 + $0x80] sm:$0xf0]  ;;  %v2801_v51 = vld [vmem:[%s4272_s3 + $0x128] sm:$0xf0]  ;;  %v2040_v53 = vld [vmem:[%s4272_s3 + $0x6c] sm:$0xf0] }
   0xd   :  { %566 = vmatpush.bf16.msrb.mxu0 %v2171_v26  ;;  %1986 = vmatmul.msk.bf16.vlgmr.msra.gmra.mxu1 %vm89_vm1, %v43_v29  ;;  %v2776_v52 = vld [vmem:[%s4272_s3 + $0x64] sm:$0xf]  ;;  %v2051_v54 = vor.u32 %v2780_v50, %v2050_v49  ;;  %v2135_v55 = vor.u32 %v2801_v51, %v2134_v48  ;;  %v2122_v57 = vld [vmem:[%s4272_s3 + $0x108] sm:$0xf]  ;;  %v2798_v58 = vld [vmem:[%s4272_s3 + $0x110] sm:$0xf0] }
   0xe   :  { %594 = vmatpush.bf16.msrb.mxu2 %v2079_v30  ;;  %v2043_v56 = vor.u32 %v2776_v52, %v2040_v53  ;;  %v2773_v59 = vld [vmem:[%s4272_s3 + $0x4c] sm:$0xf]  ;;  %v2028_v60 = vld [vmem:[%s4272_s3 + $0x54] sm:$0xf0]  ;;  %v2123_v61 = vor.u32 %v2798_v58, %v2122_v57  ;;  %v2110_v63 = vld [vmem:[%s4272_s3 + $0xf0] sm:$0xf] }
   0xf   :  { %1987 = vmatmul.msk.bf16.vlgmr.msra.gmra.mxu2 %vm89_vm1, %v43_v29  ;;  %v2031_v62 = vor.u32 %v2773_v59, %v2028_v60  ;;  %v2795_v0 = vld [vmem:[%s4272_s3 + $0xf8] sm:$0xf0]  ;;  %v2770_v1 = vld [vmem:[%s4272_s3 + $0x34] sm:$0xf]  ;;  %v2016_v2 = vld [vmem:[%s4272_s3 + $0x3c] sm:$0xf0] }
  0x10   :  { %553 = vmatpush.bf16.msra.mxu3 %v2063_v45  ;;  %v2111_v3 = vor.u32 %v2795_v0, %v2110_v63  ;;  %v2019_v4 = vor.u32 %v2770_v1, %v2016_v2  ;;  %v2098_v5 = vld [vmem:[%s4272_s3 + $0xd8] sm:$0xf]  ;;  %v2792_v6 = vld [vmem:[%s4272_s3 + $0xe0] sm:$0xf0]  ;;  %v2767_v7 = vld [vmem:[%s4272_s3 + $0x1c] sm:$0xf] }
  0x11   :  { %567 = vmatpush.bf16.msrb.mxu0 %v2159_v34  ;;  %v2099_v8 = vor.u32 %v2792_v6, %v2098_v5  ;;  %v2004_v9 = vld [vmem:[%s4272_s3 + $0x24] sm:$0xf0]  ;;  %v2038_v10 = vld [vmem:[%s4272_s3 + $0x60] sm:$0xf]  ;;  %v2777_v11 = vld [vmem:[%s4272_s3 + $0x68] sm:$0xf0] }
  0x12   :  { %595 = vmatpush.bf16.msrb.mxu2 %v2067_v35  ;;  %v2007_v12 = vor.u32 %v2767_v7, %v2004_v9  ;;  %v2039_v13 = vor.u32 %v2777_v11, %v2038_v10  ;;  %v2206_v14 = vld [vmem:[%s4272_s3 + $0x1b0] sm:$0xf]  ;;  %v2819_v15 = vld [vmem:[%s4272_s3 + $0x1b8] sm:$0x30]  ;;  %v2086_v17 = vld [vmem:[%s4272_s3 + $0xc0] sm:$0xf] }
  0x13   :  { %v2207_v16 = vor.u32 %v2819_v15, %v2206_v14  ;;  %v2789_v18 = vld [vmem:[%s4272_s3 + $0xc8] sm:$0xf0]  ;;  %v2764_v19 = vld [vmem:[%s4272_s3 + $0x4] sm:$0xf]  ;;  %v1992_v22 = vld [vmem:[%s4272_s3 + $0xc] sm:$0xf0] }
  0x14   :  { %554 = vmatpush.bf16.msra.mxu3 %v2051_v54  ;;  %v2087_v21 = vor.u32 %v2789_v18, %v2086_v17  ;;  %v2026_v23 = vld [vmem:[%s4272_s3 + $0x48] sm:$0xf]  ;;  %v1995_v24 = vor.u32 %v2764_v19, %v1992_v22  ;;  %v2774_v25 = vld [vmem:[%s4272_s3 + $0x50] sm:$0xf0]  ;;  %v2082_v26 = vld [vmem:[%s4272_s3 + $0xb0] sm:$0xf] }
  0x15   :  { %568 = vmatpush.bf16.msrb.mxu0 %v2147_v46  ;;  %v544_v20 = vsel %vm93_vm0, %v2207_v16, 0  ;;  %v2787_v27 = vld [vmem:[%s4272_s3 + $0xb8] sm:$0xf0]  ;;  %v2027_v28 = vor.u32 %v2774_v25, %v2026_v23  ;;  %v2178_v30 = vld [vmem:[%s4272_s3 + $0x170] sm:$0xf] }
  0x16   :  { %596 = vmatpush.bf16.msrb.mxu2 %v2055_v47  ;;  %585 = vmatpush.bf16.msrb.mxu1 %v544_v20  ;;  %v2083_v29 = vor.u32 %v2787_v27, %v2082_v26  ;;  %v2811_v31 = vld [vmem:[%s4272_s3 + $0x178] sm:$0xf0]  ;;  %v2194_v33 = vld [vmem:[%s4272_s3 + $0x198] sm:$0xf]  ;;  %v2816_v34 = vld [vmem:[%s4272_s3 + $0x1a0] sm:$0xf0] }
  0x17   :  { %v2179_v32 = vor.u32 %v2811_v31, %v2178_v30  ;;  %v2195_v35 = vor.u32 %v2816_v34, %v2194_v33  ;;  %v2014_v36 = vld [vmem:[%s4272_s3 + $0x30] sm:$0xf]  ;;  %v2771_v37 = vld [vmem:[%s4272_s3 + $0x38] sm:$0xf0]  ;;  %v2070_v38 = vld [vmem:[%s4272_s3 + $0x98] sm:$0xf] }
  0x18   :  { %555 = vmatpush.bf16.msra.mxu3 %v2039_v13  ;;  %v2015_v39 = vor.u32 %v2771_v37, %v2014_v36  ;;  %v2784_v40 = vld [vmem:[%s4272_s3 + $0xa0] sm:$0xf0]  ;;  %v2166_v41 = vld [vmem:[%s4272_s3 + $0x158] sm:$0xf]  ;;  %v2182_v45 = vld [vmem:[%s4272_s3 + $0x180] sm:$0xf] }
  0x19   :  { %569 = vmatpush.bf16.msrb.mxu0 %v2135_v55  ;;  %v2808_v42 = vld [vmem:[%s4272_s3 + $0x160] sm:$0xf0]  ;;  %v2071_v43 = vor.u32 %v2784_v40, %v2070_v38  ;;  %v2813_v46 = vld [vmem:[%s4272_s3 + $0x188] sm:$0xf0]  ;;  %v2172_v49 = vld [vmem:[%s4272_s3 + $0x174] sm:$0xf0] }
  0x1a   :  { %597 = vmatpush.bf16.msrb.mxu2 %v2043_v56  ;;  %586 = vmatpush.bf16.msrb.mxu1 %v2195_v35  ;;  %v2167_v44 = vor.u32 %v2808_v42, %v2166_v41  ;;  %v2809_v47 = vld [vmem:[%s4272_s3 + $0x16c] sm:$0xf]  ;;  %v2183_v48 = vor.u32 %v2813_v46, %v2182_v45  ;;  %v2002_v51 = vld [vmem:[%s4272_s3 + $0x18] sm:$0xf]  ;;  %v2768_v52 = vld [vmem:[%s4272_s3 + $0x20] sm:$0xf0] }
  0x1b   :  { %v2175_v50 = vor.u32 %v2809_v47, %v2172_v49  ;;  %v2058_v53 = vld [vmem:[%s4272_s3 + $0x80] sm:$0xf]  ;;  %v2003_v54 = vor.u32 %v2768_v52, %v2002_v51  ;;  %v2781_v55 = vld [vmem:[%s4272_s3 + $0x88] sm:$0xf0]  ;;  %v2806_v60 = vld [vmem:[%s4272_s3 + $0x154] sm:$0xf] }
  0x1c   :  { %556 = vmatpush.bf16.msra.mxu3 %v2027_v28  ;;  %v2154_v56 = vld [vmem:[%s4272_s3 + $0x140] sm:$0xf]  ;;  %v2805_v57 = vld [vmem:[%s4272_s3 + $0x148] sm:$0xf0]  ;;  %v2059_v58 = vor.u32 %v2781_v55, %v2058_v53  ;;  %v2046_v1 = vld [vmem:[%s4272_s3 + $0x68] sm:$0xf] }
  0x1d   :  { %570 = vmatpush.bf16.msrb.mxu0 %v2123_v61  ;;  %v2155_v59 = vor.u32 %v2805_v57, %v2154_v56  ;;  %v2160_v61 = vld [vmem:[%s4272_s3 + $0x15c] sm:$0xf0]  ;;  %v2765_v0 = vld [vmem:[%s4272_s3 + $0x8] sm:$0xf0]  ;;  %v2802_v5 = vld [vmem:[%s4272_s3 + $0x130] sm:$0xf0] }
  0x1e   :  { %598 = vmatpush.bf16.msrb.mxu2 %v2031_v62  ;;  %587 = vmatpush.bf16.msrb.mxu1 %v2183_v48  ;;  %v2163_v62 = vor.u32 %v2806_v60, %v2160_v61  ;;  %v1990_v63 = vld [vmem:[%s4272_s3] sm:$0xf]  ;;  %v2148_v9 = vld [vmem:[%s4272_s3 + $0x144] sm:$0xf0]  ;;  %v2034_v11 = vld [vmem:[%s4272_s3 + $0x50] sm:$0xf] }
  0x1f   :  { %v1991_v2 = vor.u32 %v2765_v0, %v1990_v63  ;;  %v2130_v13 = vld [vmem:[%s4272_s3 + $0x110] sm:$0xf]  ;;  %v2799_v15 = vld [vmem:[%s4272_s3 + $0x118] sm:$0xf0]  ;;  %v2818_v16 = vld [vmem:[%s4272_s3 + $0x1b4] sm:$0xf] }
  0x20   :  { %557 = vmatpush.bf16.msra.mxu3 %v2015_v39  ;;  %v2208_v17 = vld [vmem:[%s4272_s3 + $0x1bc] sm:$0x30]  ;;  %v2131_v18 = vor.u32 %v2799_v15, %v2130_v13  ;;  %v2800_v19 = vld [vmem:[%s4272_s3 + $0x124] sm:$0xf]  ;;  %v2022_v22 = vld [vmem:[%s4272_s3 + $0x38] sm:$0xf] }
  0x21   :  { %571 = vmatpush.bf16.msrb.mxu0 %v2111_v3  ;;  %v2778_v3 = vld [vmem:[%s4272_s3 + $0x70] sm:$0xf0]  ;;  %v2211_v20 = vor.u32 %v2818_v16, %v2208_v17  ;;  %v2772_v23 = vld [vmem:[%s4272_s3 + $0x40] sm:$0xf0]  ;;  %v2118_v26 = vld [vmem:[%s4272_s3 + $0xf8] sm:$0xf] }
  0x22   :  { %599 = vmatpush.bf16.msrb.mxu2 %v2019_v4  ;;  %608 = vmatpush.bf16.msra.mxu1 %v2175_v50  ;;  %v2142_v4 = vld [vmem:[%s4272_s3 + $0x128] sm:$0xf]  ;;  %v2047_v6 = vor.u32 %v2778_v3, %v2046_v1  ;;  %v2023_v25 = vor.u32 %v2772_v23, %v2022_v22  ;;  %v2796_v27 = vld [vmem:[%s4272_s3 + $0x100] sm:$0xf0]  ;;  %v2797_v30 = vld [vmem:[%s4272_s3 + $0x10c] sm:$0xf] }
  0x23   :  { %v2143_v7 = vor.u32 %v2802_v5, %v2142_v4  ;;  %v547_v28 = vsel %vm93_vm0, %v2211_v20, 0  ;;  %v2124_v31 = vld [vmem:[%s4272_s3 + $0x114] sm:$0xf0]  ;;  %v2815_v33 = vld [vmem:[%s4272_s3 + $0x19c] sm:$0xf] }
  0x24   :  { %558 = vmatpush.bf16.msra.mxu3 %v2003_v54  ;;  %v2196_v34 = vld [vmem:[%s4272_s3 + $0x1a4] sm:$0xf0]  ;;  %v2010_v35 = vld [vmem:[%s4272_s3 + $0x20] sm:$0xf]  ;;  %v2769_v38 = vld [vmem:[%s4272_s3 + $0x28] sm:$0xf0] }
  0x25   :  { %572 = vmatpush.bf16.msrb.mxu0 %v2099_v8  ;;  %v2803_v8 = vld [vmem:[%s4272_s3 + $0x13c] sm:$0xf]  ;;  %v52_v36 = vld [vmem:[%s4273_s2] sm:$0x7]  ;;  %v2199_v37 = vor.u32 %v2815_v33, %v2196_v34  ;;  %v2793_v40 = vld [vmem:[%s4272_s3 + $0xe8] sm:$0xf0]  ;;  %v2011_v41 = vor.u32 %v2769_v38, %v2010_v35 }
  0x26   :  { %600 = vmatpush.bf16.msrb.mxu2 %v2007_v12  ;;  %609 = vmatpush.bf16.msra.mxu1 %v2163_v62  ;;  %v2151_v10 = vor.u32 %v2803_v8, %v2148_v9  ;;  %v2775_v12 = vld [vmem:[%s4272_s3 + $0x58] sm:$0xf0]  ;;  %v2106_v39 = vld [vmem:[%s4272_s3 + $0xe0] sm:$0xf]  ;;  %v2812_v45 = vld [vmem:[%s4272_s3 + $0x184] sm:$0xf] }
  0x27   :  { %v2035_v14 = vor.u32 %v2775_v12, %v2034_v11  ;;  %v2107_v42 = vor.u32 %v2793_v40, %v2106_v39  ;;  %v2184_v47 = vld [vmem:[%s4272_s3 + $0x18c] sm:$0xf0]  ;;  %v1998_v48 = vld [vmem:[%s4272_s3 + $0x8] sm:$0xf]  ;;  %v2766_v49 = vld [vmem:[%s4272_s3 + $0x10] sm:$0xf0] }
  0x28   :  { %559 = vmatpush.bf16.msra.mxu3 %v1991_v2  ;;  %v2187_v50 = vor.u32 %v2812_v45, %v2184_v47  ;;  %v1999_v51 = vor.u32 %v2766_v49, %v1998_v48  ;;  %v2094_v52 = vld [vmem:[%s4272_s3 + $0xc8] sm:$0xf]  ;;  %v2790_v53 = vld [vmem:[%s4272_s3 + $0xd0] sm:$0xf0]  ;;  %v2791_v54 = vld [vmem:[%s4272_s3 + $0xdc] sm:$0xf] }
  0x29   :  { %573 = vmatpush.bf16.msrb.mxu0 %v2087_v21  ;;  %v2136_v21 = vld [vmem:[%s4272_s3 + $0x12c] sm:$0xf0]  ;;  %v2095_v56 = vor.u32 %v2790_v53, %v2094_v52  ;;  %v2100_v57 = vld [vmem:[%s4272_s3 + $0xe4] sm:$0xf0]  ;;  %v55_v60 = vperm.slane %v52_v36, 1  ;;  %v56_v4 = vperm.slane %v52_v36, 2 }
  0x2a   :  { %601 = vmatpush.bf16.msrb.mxu2 %v1995_v24  ;;  %610 = vmatpush.bf16.msra.mxu1 %v2151_v10  ;;  %v2139_v24 = vor.u32 %v2800_v19, %v2136_v21  ;;  %v2103_v61 = vor.u32 %v2791_v54, %v2100_v57  ;;  %v2788_v63 = vld [vmem:[%s4272_s3 + $0xc4] sm:$0xf]  ;;  %v2088_v1 = vld [vmem:[%s4272_s3 + $0xcc] sm:$0xf0]  ;;  %v2214_v9 = vld [vmem:[%s4272_s3 + $0x1b8] sm:$0xf] }
  0x2b   :  { %v2091_v3 = vor.u32 %v2788_v63, %v2088_v1  ;;  %v2820_v10 = vld [vmem:[%s4272_s3 + $0x1c0] sm:$0x30]  ;;  %v2202_v21 = vld [vmem:[%s4272_s3 + $0x1a0] sm:$0xf]  ;;  %v2817_v22 = vld [vmem:[%s4272_s3 + $0x1a8] sm:$0xf0] }
  0x2c   :  { %627 = vmatpush.bf16.msrb.mxu3 %v547_v28  ;;  %v2215_v12 = vor.u32 %v2820_v10, %v2214_v9  ;;  %v2307_v28 = vld [vmem:[%s4274_s5 + $0xb4] sm:$0xf0]  ;;  %v2867_v38 = vld [vmem:[%s4274_s5 + $0x170] sm:$0xf0]  ;;  %v2293_v40 = vld [vmem:[%s4274_s5 + $0x90] sm:$0xf] }
  0x2d   :  { %636 = vmatpush.bf16.msra.mxu0 %v2083_v29  ;;  %v2119_v29 = vor.u32 %v2796_v27, %v2118_v26  ;;  %v2305_v26 = vld [vmem:[%s4274_s5 + $0xa8] sm:$0xf]  ;;  %v2843_v27 = vld [vmem:[%s4274_s5 + $0xb0] sm:$0xf0]  ;;  %v2389_v45 = vld [vmem:[%s4274_s5 + $0x150] sm:$0xf] }
  0x2e   :  { %650 = vmatpush.bf16.msra.mxu2 %v2179_v32  ;;  %611 = vmatpush.bf16.msra.mxu1 %v2139_v24  ;;  %v2127_v32 = vor.u32 %v2797_v30, %v2124_v31  ;;  %v550_v20 = vsel %vm93_vm0, %v2215_v12, 0  ;;  %v2842_v24 = vld [vmem:[%s4274_s5 + $0xac] sm:$0xf]  ;;  %v2190_v30 = vld [vmem:[%s4272_s3 + $0x188] sm:$0xf]  ;;  %v2306_v34 = vor.u32 %v2843_v27, %v2305_v26 }
  0x2f   :  { %v2814_v31 = vld [vmem:[%s4272_s3 + $0x190] sm:$0xf0]  ;;  %v2281_v49 = vld [vmem:[%s4274_s5 + $0x78] sm:$0xf]  ;;  %v2283_v53 = vld [vmem:[%s4274_s5 + $0x84] sm:$0xf0] }
  0x30   :  { %628 = vmatpush.bf16.msrb.mxu3 %v2199_v37  ;;  %v2401_v37 = vld [vmem:[%s4274_s5 + $0x168] sm:$0xf]  ;;  %v2377_v54 = vld [vmem:[%s4274_s5 + $0x138] sm:$0xf]  ;;  %v2365_v63 = vld [vmem:[%s4274_s5 + $0x120] sm:$0xf] }
  0x31   :  { %637 = vmatpush.bf16.msra.mxu0 %v2071_v43  ;;  %v2794_v43 = vld [vmem:[%s4272_s3 + $0xf4] sm:$0xf]  ;;  %v2402_v39 = vor.u32 %v2867_v38, %v2401_v37  ;;  %v2245_v12 = vld [vmem:[%s4274_s5 + $0x30] sm:$0xf]  ;;  %v2329_v26 = vld [vmem:[%s4274_s5 + $0xd8] sm:$0xf] }
  0x32   :  { %651 = vmatpush.bf16.msra.mxu2 %v2167_v44  ;;  %v2112_v44 = vld [vmem:[%s4272_s3 + $0xfc] sm:$0xf0]  ;;  %612 = vmatpush.bf16.msra.mxu1 %v2127_v32  ;;  %v2310_v32 = vor.u32 %v2842_v24, %v2307_v28  ;;  %v2855_v9 = vld [vmem:[%s4274_s5 + $0x110] sm:$0xf0]  ;;  %v2849_v27 = vld [vmem:[%s4274_s5 + $0xe0] sm:$0xf0] }
  0x33   :  { %v2115_v46 = vor.u32 %v2794_v43, %v2112_v44  ;;  %v2295_v44 = vld [vmem:[%s4274_s5 + $0x9c] sm:$0xf0] }
  0x34   :  { %629 = vmatpush.bf16.msrb.mxu3 %v2187_v50  ;;  %v2837_v50 = vld [vmem:[%s4274_s5 + $0x80] sm:$0xf0] }
  0x35   :  { %638 = vmatpush.bf16.msra.mxu0 %v2059_v58  ;;  %v54_v58 = vperm.slane %v52_v36, 0  ;;  %v2191_v36 = vor.u32 %v2814_v31, %v2190_v30  ;;  %v2282_v52 = vor.u32 %v2837_v50, %v2281_v49  ;;  %v2221_v30 = vld [vmem:[%s4274_s5] sm:$0xf]  ;;  %v2822_v31 = vld [vmem:[%s4274_s5 + $0x8] sm:$0xf0] }
  0x36   :  { %652 = vmatpush.bf16.msra.mxu2 %v2155_v59  ;;  %613 = vmatpush.bf16.msra.mxu1 %v2115_v46  ;;  %v2864_v46 = vld [vmem:[%s4274_s5 + $0x158] sm:$0xf0]  ;;  %v2439_v49 = vld [vmem:[%s4274_s5 + $0x1bc] sm:$0x30] }
  0x37   :  { %v2390_v48 = vor.u32 %v2864_v46, %v2389_v45  ;;  %v2437_v45 = vld [vmem:[%s4274_s5 + $0x1b0] sm:$0xf] }
  0x39   :  { %639 = vmatpush.bf16.msra.mxu0 %v2047_v6 }
  0x3a   :  { %653 = vmatpush.bf16.msra.mxu2 %v2143_v7  ;;  %614 = vmatpush.bf16.msra.mxu1 %v2103_v61 }
  0x3d   :  { %640 = vmatpush.bf16.msra.mxu0 %v2035_v14 }
  0x3e   :  { %654 = vmatpush.bf16.msra.mxu2 %v2131_v18  ;;  %615 = vmatpush.bf16.msra.mxu1 %v2091_v3  ;;  %v2257_v3 = vld [vmem:[%s4274_s5 + $0x48] sm:$0xf] }
  0x41   :  { %641 = vmatpush.bf16.msra.mxu0 %v2023_v25  ;;  %v2203_v25 = vor.u32 %v2817_v22, %v2202_v21  ;;  %v2233_v21 = vld [vmem:[%s4274_s5 + $0x18] sm:$0xf]  ;;  %v2825_v22 = vld [vmem:[%s4274_s5 + $0x20] sm:$0xf0] }
  0x42   :  { %655 = vmatpush.bf16.msra.mxu2 %v2119_v29  ;;  %v2234_v24 = vor.u32 %v2825_v22, %v2233_v21  ;;  %v2445_v21 = vld [vmem:[%s4274_s5 + $0x1b8] sm:$0xf]  ;;  %v2877_v22 = vld [vmem:[%s4274_s5 + $0x1c0] sm:$0x30] }
  0x45   :  { %642 = vmatpush.bf16.msra.mxu0 %v2011_v41  ;;  %v2840_v41 = vld [vmem:[%s4274_s5 + $0x98] sm:$0xf0] }
  0x46   :  { %656 = vmatpush.bf16.msra.mxu2 %v2107_v42  ;;  %v2839_v42 = vld [vmem:[%s4274_s5 + $0x94] sm:$0xf]  ;;  %v2294_v43 = vor.u32 %v2840_v41, %v2293_v40  ;;  %v2844_v40 = vld [vmem:[%s4274_s5 + $0xb8] sm:$0xf0] }
  0x47   :  { %v2298_v47 = vor.u32 %v2839_v42, %v2295_v44  ;;  %v3615_v42 = vld [vmem:[%s4275_s4] sm:$0x7]  ;;  %v2841_v44 = vld [vmem:[%s4274_s5 + $0xa0] sm:$0xf0] }
  0x49   :  { %643 = vmatpush.bf16.msra.mxu0 %v1999_v51  ;;  %v2836_v51 = vld [vmem:[%s4274_s5 + $0x7c] sm:$0xf] }
  0x4a   :  { %657 = vmatpush.bf16.msra.mxu2 %v2095_v56  ;;  %v2861_v56 = vld [vmem:[%s4274_s5 + $0x140] sm:$0xf0] }
  0x4b   :  { %v2378_v57 = vor.u32 %v2861_v56, %v2377_v54  ;;  %v2838_v56 = vld [vmem:[%s4274_s5 + $0x88] sm:$0xf0] }
  0x89   :  { %v112_v55 = vpop.f32.mrf.mxu0 }
  0x8a   :  { %v126_v59 = vpop.f32.mrf.mxu1  ;;  %v113_v62 = vadd.f32 %v112_v55, %v54_v58  ;;  %v2286_v55 = vor.u32 %v2836_v51, %v2283_v53 }
  0x8b   :  { %v127_v0 = vadd.f32 %v126_v59, %v55_v60  ;;  %v2834_v59 = vld [vmem:[%s4274_s5 + $0x68] sm:$0xf0] }
  0x8c   :  { %2955 = vtanh.f32 %v113_v62  ;;  %v2271_v62 = vld [vmem:[%s4274_s5 + $0x6c] sm:$0xf0] }
  0x8d   :  { %2957 = vtanh.f32 %v127_v0  ;;  %v2858_v0 = vld [vmem:[%s4274_s5 + $0x128] sm:$0xf0] }
  0x91   :  { %v114_v5 = vpop.f32.mrf.mxu0 }
  0x92   :  { %v140_v2 = vpop.f32.mrf.mxu2  ;;  %v115_v6 = vadd.f32 %v114_v5, %v54_v58  ;;  %v128_v7 = vpop.f32.mrf.mxu1  ;;  %v2269_v58 = vld [vmem:[%s4274_s5 + $0x60] sm:$0xf]  ;;  %v2830_v5 = vld [vmem:[%s4274_s5 + $0x4c] sm:$0xf] }
  0x93   :  { %v129_v8 = vadd.f32 %v128_v7, %v55_v60  ;;  %v141_v11 = vadd.f32 %v140_v2, %v56_v4  ;;  %v2956_v13 = vpop.eup %2955  ;;  %v2833_v60 = vld [vmem:[%s4274_s5 + $0x64] sm:$0xf]  ;;  %v2270_v61 = vor.u32 %v2834_v59, %v2269_v58  ;;  %v2366_v2 = vor.u32 %v2858_v0, %v2365_v63  ;;  %v2259_v7 = vld [vmem:[%s4274_s5 + $0x54] sm:$0xf0] }
  0x94   :  { %2959 = vtanh.f32 %v115_v6  ;;  %v2958_v15 = vpop.eup %2957  ;;  %v2274_v1 = vor.u32 %v2833_v60, %v2271_v62  ;;  %v2262_v10 = vor.u32 %v2830_v5, %v2259_v7  ;;  %v2425_v58 = vld [vmem:[%s4274_s5 + $0x198] sm:$0xf]  ;;  %v2873_v59 = vld [vmem:[%s4274_s5 + $0x1a0] sm:$0xf0]  ;;  %v2872_v60 = vld [vmem:[%s4274_s5 + $0x19c] sm:$0xf] }
  0x95   :  { %2961 = vtanh.f32 %v129_v8  ;;  %v2353_v8 = vld [vmem:[%s4274_s5 + $0x108] sm:$0xf]  ;;  %v2413_v7 = vld [vmem:[%s4274_s5 + $0x180] sm:$0xf] }
  0x96   :  { %2963 = vtanh.f32 %v141_v11  ;;  %v2354_v11 = vor.u32 %v2855_v9, %v2353_v8  ;;  %v2427_v62 = vld [vmem:[%s4274_s5 + $0x1a4] sm:$0xf0]  ;;  %v2870_v8 = vld [vmem:[%s4274_s5 + $0x188] sm:$0xf0]  ;;  %v2869_v9 = vld [vmem:[%s4274_s5 + $0x184] sm:$0xf] }
  0x9a   :  { %v142_v14 = vpop.f32.mrf.mxu2  ;;  %v2960_v17 = vpop.eup %2959 }
  0x9b   :  { %v143_v16 = vadd.f32 %v142_v14, %v56_v4  ;;  %v2962_v18 = vpop.eup %2961  ;;  %v151_v19 = vpack.c.bf16 %v2960_v17, %v2956_v13  ;;  %v2831_v4 = vld [vmem:[%s4274_s5 + $0x50] sm:$0xf0]  ;;  %v2828_v13 = vld [vmem:[%s4274_s5 + $0x38] sm:$0xf0]  ;;  %v2341_v17 = vld [vmem:[%s4274_s5 + $0xf0] sm:$0xf] }
  0x9c   :  { %v152_v23 = vpack.c.bf16 %v2962_v18, %v2958_v15  ;;  %v2964_v29 = vpop.eup %2963  ;;  %v2258_v6 = vor.u32 %v2831_v4, %v2257_v3  ;;  %v2827_v14 = vld [vmem:[%s4274_s5 + $0x34] sm:$0xf]  ;;  %v2246_v15 = vor.u32 %v2828_v13, %v2245_v12  ;;  %v2852_v18 = vld [vmem:[%s4274_s5 + $0xf8] sm:$0xf0]  ;;  %v2277_v3 = vld [vmem:[%s4274_s5 + $0x68] sm:$0xf] }
  0x9d   :  { %2965 = vtanh.f32 %v143_v16  ;;  %560 = vmatmul.bf16.vlgmr.msra.gmra.mxu3 %v151_v19  ;;  %602 = vmatmul.bf16.vlgmr.msrb.gmra.mxu2 %v151_v19  ;;  %v2247_v16 = vld [vmem:[%s4274_s5 + $0x3c] sm:$0xf0]  ;;  %v2835_v4 = vld [vmem:[%s4274_s5 + $0x70] sm:$0xf0]  ;;  %v2866_v12 = vld [vmem:[%s4274_s5 + $0x16c] sm:$0xf] }
  0x9e   :  { %574 = vmatmul.bf16.vlgmr.msrb.gmra.mxu0 %v152_v23  ;;  %669 = vmatpush.bf16.msra.mxu3 %v550_v20  ;;  %v2342_v20 = vor.u32 %v2852_v18, %v2341_v17  ;;  %v2403_v13 = vld [vmem:[%s4274_s5 + $0x174] sm:$0xf0]  ;;  %v2832_v17 = vld [vmem:[%s4274_s5 + $0x58] sm:$0xf0] }
  0x9f   :  { %1126 = vmatpush.bf16.msrb.mxu2 %v2310_v32  ;;  %v2821_v32 = vld [vmem:[%s4274_s5 + $0x4] sm:$0xf] }
  0xa2   :  { %670 = vmatpush.bf16.msra.mxu3 %v2203_v25  ;;  %v2235_v25 = vld [vmem:[%s4274_s5 + $0x24] sm:$0xf0] }
  0xa3   :  { %v2966_v33 = vpop.eup %2965  ;;  %1127 = vmatpush.bf16.msrb.mxu2 %v2298_v47  ;;  %v2876_v47 = vld [vmem:[%s4274_s5 + $0x1b8] sm:$0x30] }
  0xa4   :  { %v153_v35 = vpack.c.bf16 %v2966_v33, %v2964_v29  ;;  %v2330_v29 = vor.u32 %v2849_v27, %v2329_v26  ;;  %v2222_v33 = vor.u32 %v2822_v31, %v2221_v30  ;;  %v2438_v50 = vor.u32 %v2876_v47, %v2437_v45  ;;  %v2253_v31 = vld [vmem:[%s4274_s5 + $0x38] sm:$0xf]  ;;  %v2241_v45 = vld [vmem:[%s4274_s5 + $0x20] sm:$0xf] }
  0xa6   :  { %2216 = vmatmul.msk.bf16.vlgmr.msrb.gmra.mxu1 %vm539_vm2, %v153_v35  ;;  %671 = vmatpush.bf16.msra.mxu3 %v2191_v36  ;;  %v2846_v36 = vld [vmem:[%s4274_s5 + $0xc8] sm:$0xf0]  ;;  %v1076_v53 = vsel %vm93_vm0, %v2438_v50, 0  ;;  %v2367_v50 = vld [vmem:[%s4274_s5 + $0x12c] sm:$0xf0] }
  0xa7   :  { %1084 = vmatpush.bf16.msrb.mxu1 %v2306_v34  ;;  %1128 = vmatpush.bf16.msrb.mxu2 %v2286_v55  ;;  %v2223_v34 = vld [vmem:[%s4274_s5 + $0xc] sm:$0xf0]  ;;  %v2289_v55 = vld [vmem:[%s4274_s5 + $0x80] sm:$0xf] }
  0xa8   :  { %v2226_v37 = vor.u32 %v2821_v32, %v2223_v34  ;;  %1117 = vmatpush.bf16.msrb.mxu0 %v1076_v53  ;;  %v2829_v32 = vld [vmem:[%s4274_s5 + $0x40] sm:$0xf0] }
  0xab   :  { %1085 = vmatpush.bf16.msrb.mxu1 %v2294_v43  ;;  %1129 = vmatpush.bf16.msrb.mxu2 %v2274_v1  ;;  %v2301_v43 = vld [vmem:[%s4274_s5 + $0x98] sm:$0xf]  ;;  %v2430_v1 = vor.u32 %v2872_v60, %v2427_v62  ;;  %v2409_v60 = vld [vmem:[%s4274_s5 + $0x170] sm:$0xf] }
  0xac   :  { %v2302_v46 = vor.u32 %v2841_v44, %v2301_v43 }
  0xad   :  { %2217 = vmatmul.msk.bf16.vlgmr.msrb.gmra.mxu3 %vm539_vm2, %v153_v35  ;;  %658 = vmatmul.bf16.vlgmr.msra.gmra.mxu2 %v152_v23 }
  0xae   :  { %644 = vmatmul.bf16.vlgmr.msra.gmra.mxu0 %v151_v19  ;;  %1098 = vmatpush.bf16.msrb.mxu3 %v2402_v39  ;;  %v2250_v19 = vor.u32 %v2827_v14, %v2247_v16  ;;  %v2313_v39 = vld [vmem:[%s4274_s5 + $0xb0] sm:$0xf] }
  0xaf   :  { %1086 = vmatpush.bf16.msrb.mxu1 %v2282_v52  ;;  %1130 = vmatpush.bf16.msrb.mxu2 %v2262_v10  ;;  %v2314_v41 = vor.u32 %v2844_v40, %v2313_v39  ;;  %v232_v52 = vperm.slane %v3615_v42, 0  ;;  %v2414_v10 = vor.u32 %v2870_v8, %v2413_v7  ;;  %v2265_v16 = vld [vmem:[%s4274_s5 + $0x50] sm:$0xf]  ;;  %v2433_v40 = vld [vmem:[%s4274_s5 + $0x1a0] sm:$0xf] }
  0xb0   :  { %v2397_v8 = vld [vmem:[%s4274_s5 + $0x158] sm:$0xf] }
  0xb2   :  { %1099 = vmatpush.bf16.msrb.mxu3 %v2390_v48  ;;  %v2875_v48 = vld [vmem:[%s4274_s5 + $0x1b4] sm:$0xf] }
  0xb3   :  { %1087 = vmatpush.bf16.msrb.mxu1 %v2270_v61  ;;  %1131 = vmatpush.bf16.msrb.mxu2 %v2250_v19  ;;  %v2442_v51 = vor.u32 %v2875_v48, %v2439_v49  ;;  %v2426_v61 = vor.u32 %v2873_v59, %v2425_v58  ;;  %v233_v48 = vperm.slane %v3615_v42, 1  ;;  %v2857_v49 = vld [vmem:[%s4274_s5 + $0x124] sm:$0xf]  ;;  %v2229_v58 = vld [vmem:[%s4274_s5 + $0x8] sm:$0xf] }
  0xb4   :  { %v2370_v53 = vor.u32 %v2857_v49, %v2367_v50  ;;  %v2823_v59 = vld [vmem:[%s4274_s5 + $0x10] sm:$0xf0]  ;;  %v2853_v49 = vld [vmem:[%s4274_s5 + $0x100] sm:$0xf0] }
  0xb5   :  { %v1079_v54 = vsel %vm93_vm0, %v2442_v51, 0  ;;  %1118 = vmatpush.bf16.msrb.mxu0 %v2426_v61  ;;  %v2868_v61 = vld [vmem:[%s4274_s5 + $0x178] sm:$0xf0]  ;;  %v2230_v62 = vor.u32 %v2823_v59, %v2229_v58  ;;  %v2847_v58 = vld [vmem:[%s4274_s5 + $0xd0] sm:$0xf0] }
  0xb6   :  { %616 = vmatmul.bf16.vlgmr.msra.gmra.mxu1 %v152_v23  ;;  %1100 = vmatpush.bf16.msrb.mxu3 %v2378_v57  ;;  %v2824_v23 = vld [vmem:[%s4274_s5 + $0x1c] sm:$0xf]  ;;  %v2290_v57 = vor.u32 %v2838_v56, %v2289_v55  ;;  %v2871_v55 = vld [vmem:[%s4274_s5 + $0x190] sm:$0xf0] }
  0xb7   :  { %1088 = vmatpush.bf16.msrb.mxu1 %v2258_v6  ;;  %v2238_v28 = vor.u32 %v2824_v23, %v2235_v25  ;;  %v2278_v6 = vor.u32 %v2835_v4, %v2277_v3  ;;  %v2863_v23 = vld [vmem:[%s4274_s5 + $0x154] sm:$0xf]  ;;  %v2446_v25 = vor.u32 %v2877_v22, %v2445_v21 }
  0xb9   :  { %1132 = vmatpush.bf16.msrb.mxu2 %v2238_v28  ;;  %1119 = vmatpush.bf16.msrb.mxu0 %v2414_v10  ;;  %v1082_v30 = vsel %vm93_vm0, %v2446_v25, 0  ;;  %v2851_v10 = vld [vmem:[%s4274_s5 + $0xf4] sm:$0xf] }
  0xba   :  { %1101 = vmatpush.bf16.msrb.mxu3 %v2366_v2 }
  0xbb   :  { %1089 = vmatpush.bf16.msrb.mxu1 %v2246_v15  ;;  %v2406_v15 = vor.u32 %v2866_v12, %v2403_v13 }
  0xbd   :  { %2218 = vmatmul.msk.bf16.vlgmr.msra.gmra.mxu3 %vm539_vm2, %v153_v35  ;;  %v2317_v35 = vld [vmem:[%s4274_s5 + $0xc0] sm:$0xf]  ;;  %1133 = vmatpush.bf16.msrb.mxu2 %v2226_v37  ;;  %v2860_v37 = vld [vmem:[%s4274_s5 + $0x13c] sm:$0xf] }
  0xbe   :  { %1102 = vmatpush.bf16.msrb.mxu3 %v2354_v11  ;;  %v2318_v38 = vor.u32 %v2846_v36, %v2317_v35  ;;  %v2415_v11 = vld [vmem:[%s4274_s5 + $0x18c] sm:$0xf0]  ;;  %1140 = vmatpush.bf16.msra.mxu0 %v2406_v15  ;;  %v2254_v35 = vor.u32 %v2829_v32, %v2253_v31  ;;  %v2373_v31 = vld [vmem:[%s4274_s5 + $0x128] sm:$0xf]  ;;  %v2859_v32 = vld [vmem:[%s4274_s5 + $0x130] sm:$0xf0] }
  0xbf   :  { %1090 = vmatpush.bf16.msrb.mxu1 %v2234_v24  ;;  %v2418_v14 = vor.u32 %v2869_v9, %v2415_v11  ;;  %v2391_v24 = vld [vmem:[%s4274_s5 + $0x15c] sm:$0xf0]  ;;  %v2865_v9 = vld [vmem:[%s4274_s5 + $0x160] sm:$0xf0] }
  0xc0   :  { %v2394_v27 = vor.u32 %v2863_v23, %v2391_v24  ;;  %v2343_v11 = vld [vmem:[%s4274_s5 + $0xfc] sm:$0xf0]  ;;  %v2862_v24 = vld [vmem:[%s4274_s5 + $0x148] sm:$0xf0] }
  0xc1   :  { %1201 = vmatpush.bf16.msra.mxu2 %v1082_v30  ;;  %v2346_v15 = vor.u32 %v2851_v10, %v2343_v11  ;;  %v2385_v23 = vld [vmem:[%s4274_s5 + $0x140] sm:$0xf]  ;;  %v234_v30 = vperm.slane %v3615_v42, 2  ;;  %v2361_v42 = vld [vmem:[%s4274_s5 + $0x110] sm:$0xf] }
  0xc2   :  { %1103 = vmatpush.bf16.msrb.mxu3 %v2342_v20  ;;  %v2266_v20 = vor.u32 %v2832_v17, %v2265_v16  ;;  %1141 = vmatpush.bf16.msra.mxu0 %v2394_v27  ;;  %v2848_v16 = vld [vmem:[%s4274_s5 + $0xdc] sm:$0xf]  ;;  %v2331_v17 = vld [vmem:[%s4274_s5 + $0xe4] sm:$0xf0]  ;;  %v2845_v27 = vld [vmem:[%s4274_s5 + $0xc4] sm:$0xf] }
  0xc3   :  { %1091 = vmatpush.bf16.msrb.mxu1 %v2222_v33  ;;  %v2334_v25 = vor.u32 %v2848_v16, %v2331_v17  ;;  %v2896_v10 = vld [vmem:[%s4276_s7 + $0x94] sm:$0xf]  ;;  %v2500_v17 = vld [vmem:[%s4276_s7 + $0x60] sm:$0xf] }
  0xc6   :  { %1104 = vmatpush.bf16.msrb.mxu3 %v2330_v29 }
  0xc7   :  { %1159 = vmatpush.bf16.msra.mxu1 %v1079_v54  ;;  %v2421_v54 = vld [vmem:[%s4274_s5 + $0x188] sm:$0xf] }
  0xca   :  { %1105 = vmatpush.bf16.msrb.mxu3 %v2318_v38  ;;  %v2379_v38 = vld [vmem:[%s4274_s5 + $0x144] sm:$0xf0] }
  0xcb   :  { %1160 = vmatpush.bf16.msra.mxu1 %v2430_v1  ;;  %v2382_v39 = vor.u32 %v2860_v37, %v2379_v38  ;;  %v2355_v1 = vld [vmem:[%s4274_s5 + $0x114] sm:$0xf0]  ;;  %v2856_v38 = vld [vmem:[%s4274_s5 + $0x118] sm:$0xf0] }
  0xcd   :  { %1142 = vmatpush.bf16.msra.mxu0 %v2382_v39 }
  0xce   :  { %1168 = vmatpush.bf16.msra.mxu3 %v2314_v41  ;;  %v2874_v41 = vld [vmem:[%s4274_s5 + $0x1a8] sm:$0xf0] }
  0xcf   :  { %1161 = vmatpush.bf16.msra.mxu1 %v2418_v14  ;;  %v2434_v44 = vor.u32 %v2874_v41, %v2433_v40 }
  0xd1   :  { %1202 = vmatpush.bf16.msra.mxu2 %v2434_v44  ;;  %1143 = vmatpush.bf16.msra.mxu0 %v2370_v53 }
  0xd2   :  { %1169 = vmatpush.bf16.msra.mxu3 %v2302_v46  ;;  %v2826_v46 = vld [vmem:[%s4274_s5 + $0x28] sm:$0xf0] }
  0xd3   :  { %v2242_v47 = vor.u32 %v2826_v46, %v2241_v45  ;;  %v2362_v46 = vor.u32 %v2856_v38, %v2361_v42  ;;  %v2490_v38 = vld [vmem:[%s4276_s7 + $0x54] sm:$0xf0] }
  0xd6   :  { %1170 = vmatpush.bf16.msra.mxu3 %v2290_v57  ;;  %v2422_v57 = vor.u32 %v2871_v55, %v2421_v54  ;;  %v2337_v54 = vld [vmem:[%s4274_s5 + $0xe0] sm:$0xf]  ;;  %v2850_v55 = vld [vmem:[%s4274_s5 + $0xe8] sm:$0xf0] }
  0xd8   :  { %1203 = vmatpush.bf16.msra.mxu2 %v2422_v57  ;;  %v2325_v57 = vld [vmem:[%s4274_s5 + $0xc8] sm:$0xf] }
  0xda   :  { %1171 = vmatpush.bf16.msra.mxu3 %v2278_v6  ;;  %v2410_v6 = vor.u32 %v2868_v61, %v2409_v60  ;;  %v2326_v61 = vor.u32 %v2847_v58, %v2325_v57  ;;  %v2466_v57 = vld [vmem:[%s4276_s7 + $0x24] sm:$0xf0]  ;;  %v2572_v58 = vld [vmem:[%s4276_s7 + $0xf0] sm:$0xf] }
  0xde   :  { %1172 = vmatpush.bf16.msra.mxu3 %v2266_v20  ;;  %v2398_v20 = vor.u32 %v2865_v9, %v2397_v8  ;;  %v2512_v8 = vld [vmem:[%s4276_s7 + $0x78] sm:$0xf]  ;;  %v2894_v9 = vld [vmem:[%s4276_s7 + $0x80] sm:$0xf0] }
  0xdf   :  { %v2513_v11 = vor.u32 %v2894_v9, %v2512_v8  ;;  %v2560_v9 = vld [vmem:[%s4276_s7 + $0xd8] sm:$0xf] }
  0xe2   :  { %1173 = vmatpush.bf16.msra.mxu3 %v2254_v35  ;;  %v2374_v35 = vor.u32 %v2859_v32, %v2373_v31  ;;  %v2608_v31 = vld [vmem:[%s4276_s7 + $0x138] sm:$0xf]  ;;  %v2918_v32 = vld [vmem:[%s4276_s7 + $0x140] sm:$0xf0] }
  0xe6   :  { %1174 = vmatpush.bf16.msra.mxu3 %v2242_v47 }
  0xea   :  { %1175 = vmatpush.bf16.msra.mxu3 %v2230_v62 }
 0x11b   :  { %v575_v63 = vpop.f32.mrf.mxu0 }
 0x120   :  { %v561_v0 = vpop.f32.mrf.mxu3  ;;  %v603_v19 = vpop.f32.mrf.mxu2 }
 0x121   :  { %v562_v5 = vadd.f32 %v561_v0, %v232_v52  ;;  %v2854_v0 = vld [vmem:[%s4274_s5 + $0x10c] sm:$0xf] }
 0x122   :  { %v2358_v3 = vor.u32 %v2854_v0, %v2355_v1  ;;  %v2900_v0 = vld [vmem:[%s4276_s7 + $0xb0] sm:$0xf0] }
 0x123   :  { %v589_v2 = vpop.f32.mrf.mxu1  ;;  %v576_v18 = vadd.f32 %v575_v63, %v562_v5  ;;  %v577_v34 = vpop.f32.mrf.mxu0  ;;  %v604_v63 = vadd.f32 %v603_v19, %v233_v48 }
 0x124   :  { %1144 = vmatpush.bf16.msra.mxu0 %v2358_v3  ;;  %v2897_v3 = vld [vmem:[%s4276_s7 + $0x98] sm:$0xf0] }
 0x125   :  { %v590_v33 = vadd.f32 %v589_v2, %v576_v18 }
 0x127   :  { %2967 = vtanh.f32 %v590_v33 }
 0x128   :  { %v563_v26 = vpop.f32.mrf.mxu3  ;;  %v605_v51 = vpop.f32.mrf.mxu2  ;;  %1145 = vmatpush.bf16.msra.mxu0 %v2346_v15 }
 0x129   :  { %v564_v28 = vadd.f32 %v563_v26, %v232_v52  ;;  %v606_v12 = vadd.f32 %v605_v51, %v233_v48  ;;  %v2349_v48 = vld [vmem:[%s4274_s5 + $0xf8] sm:$0xf] }
 0x12a   :  { %v2350_v53 = vor.u32 %v2853_v49, %v2349_v48  ;;  %v2478_v48 = vld [vmem:[%s4276_s7 + $0x3c] sm:$0xf0]  ;;  %v2584_v49 = vld [vmem:[%s4276_s7 + $0x108] sm:$0xf] }
 0x12b   :  { %v591_v29 = vpop.f32.mrf.mxu1  ;;  %v578_v36 = vadd.f32 %v577_v34, %v564_v28  ;;  %v645_v13 = vpop.f32.mrf.mxu0  ;;  %v2319_v28 = vld [vmem:[%s4274_s5 + $0xcc] sm:$0xf0] }
 0x12c   :  { %1146 = vmatpush.bf16.msra.mxu0 %v2334_v25  ;;  %v2322_v33 = vor.u32 %v2845_v27, %v2319_v28  ;;  %v2888_v27 = vld [vmem:[%s4276_s7 + $0x50] sm:$0xf0]  ;;  %v2890_v28 = vld [vmem:[%s4276_s7 + $0x64] sm:$0xf] }
 0x12d   :  { %v592_v43 = vadd.f32 %v591_v29, %v578_v36  ;;  %v2968_v2 = vpop.eup %2967  ;;  %v2386_v29 = vor.u32 %v2862_v24, %v2385_v23  ;;  %v646_v36 = vadd.f32 %v645_v13, %v234_v30  ;;  %v2632_v13 = vld [vmem:[%s4276_s7 + $0x168] sm:$0xf]  ;;  %v2921_v23 = vld [vmem:[%s4276_s7 + $0x158] sm:$0xf0] }
 0x12f   :  { %2969 = vtanh.f32 %v592_v43 }
 0x130   :  { %v631_v52 = vpop.f32.mrf.mxu3  ;;  %v659_v21 = vpop.f32.mrf.mxu2  ;;  %1147 = vmatpush.bf16.msra.mxu0 %v2322_v33 }
 0x131   :  { %v660_v41 = vadd.f32 %v659_v21, %v646_v36  ;;  %v2514_v21 = vld [vmem:[%s4276_s7 + $0x84] sm:$0xf0]  ;;  %v2885_v36 = vld [vmem:[%s4276_s7 + $0x38] sm:$0xf0] }
 0x133   :  { %v617_v56 = vpop.f32.mrf.mxu1  ;;  %v647_v37 = vpop.f32.mrf.mxu0 }
 0x134   :  { %v618_v5 = vadd.f32 %v617_v56, %v604_v63  ;;  %v648_v44 = vadd.f32 %v647_v37, %v234_v30  ;;  %v2338_v56 = vor.u32 %v2850_v55, %v2337_v54  ;;  %v2536_v63 = vld [vmem:[%s4276_s7 + $0xa8] sm:$0xf]  ;;  %v2502_v30 = vld [vmem:[%s4276_s7 + $0x6c] sm:$0xf0]  ;;  %v2887_v37 = vld [vmem:[%s4276_s7 + $0x4c] sm:$0xf] }
 0x135   :  { %v2970_v4 = vpop.eup %2969  ;;  %v2537_v1 = vor.u32 %v2900_v0, %v2536_v63  ;;  %v2505_v33 = vor.u32 %v2890_v28, %v2502_v30  ;;  %v2879_v54 = vld [vmem:[%s4276_s7 + $0x8] sm:$0xf0]  ;;  %v2881_v55 = vld [vmem:[%s4276_s7 + $0x1c] sm:$0xf]  ;;  %v2932_v0 = vld [vmem:[%s4276_s7 + $0x1b4] sm:$0xf] }
 0x136   :  { %v3754_v7 = vpack.c.bf16 %v2970_v4, %v2968_v2  ;;  %v632_v18 = vadd.f32 %v631_v52, %v618_v5  ;;  %v2524_v2 = vld [vmem:[%s4276_s7 + $0x90] sm:$0xf]  ;;  %v2899_v4 = vld [vmem:[%s4276_s7 + $0xac] sm:$0xf]  ;;  %v2933_v63 = vld [vmem:[%s4276_s7 + $0x1b8] sm:$0x30] }
 0x137   :  { %v2525_v5 = vor.u32 %v2897_v3, %v2524_v2  ;;  %v2670_v3 = vld [vmem:[%s4276_s7 + $0x1bc] sm:$0x30]  ;;  %v2923_v28 = vld [vmem:[%s4276_s7 + $0x16c] sm:$0xf]  ;;  %v2544_v30 = vld [vmem:[%s4276_s7 + $0xb0] sm:$0xf] }
 0x138   :  { %v633_v14 = vpop.f32.mrf.mxu3  ;;  %1092 = vmatmul.bf16.vlgmr.msrb.gmra.mxu1 %v3754_v7  ;;  %1134 = vmatmul.bf16.vlgmr.msrb.gmra.mxu2 %v3754_v7  ;;  %2971 = vtanh.f32 %v632_v18  ;;  %v661_v43 = vpop.f32.mrf.mxu2  ;;  %v2891_v18 = vld [vmem:[%s4276_s7 + $0x68] sm:$0xf0] }
 0x139   :  { %1182 = vmatpush.bf16.msrb.mxu1 %v2410_v6  ;;  %v662_v50 = vadd.f32 %v661_v43, %v648_v44  ;;  %v2538_v6 = vld [vmem:[%s4276_s7 + $0xb4] sm:$0xf0] }
 0x13a   :  { %v2464_v44 = vld [vmem:[%s4276_s7 + $0x18] sm:$0xf] }
 0x13b   :  { %v619_v19 = vpop.f32.mrf.mxu1 }
 0x13c   :  { %v620_v22 = vadd.f32 %v619_v19, %v606_v12  ;;  %v2526_v12 = vld [vmem:[%s4276_s7 + $0x9c] sm:$0xf0]  ;;  %v2893_v19 = vld [vmem:[%s4276_s7 + $0x7c] sm:$0xf] }
 0x13d   :  { %1183 = vmatpush.bf16.msrb.mxu1 %v2398_v20  ;;  %v2529_v15 = vor.u32 %v2896_v10, %v2526_v12  ;;  %v2501_v20 = vor.u32 %v2891_v18, %v2500_v17  ;;  %v2517_v24 = vor.u32 %v2893_v19, %v2514_v21  ;;  %v2906_v10 = vld [vmem:[%s4276_s7 + $0xe0] sm:$0xf0]  ;;  %v2658_v17 = vld [vmem:[%s4276_s7 + $0x1a4] sm:$0xf0]  ;;  %v2548_v19 = vld [vmem:[%s4276_s7 + $0xc0] sm:$0xf] }
 0x13e   :  { %v634_v26 = vadd.f32 %v633_v14, %v620_v22  ;;  %v2972_v39 = vpop.eup %2971  ;;  %v2924_v14 = vld [vmem:[%s4276_s7 + $0x170] sm:$0xf0]  ;;  %v2620_v22 = vld [vmem:[%s4276_s7 + $0x150] sm:$0xf]  ;;  %v2561_v12 = vor.u32 %v2906_v10, %v2560_v9  ;;  %v2644_v21 = vld [vmem:[%s4276_s7 + $0x180] sm:$0xf] }
 0x13f   :  { %v2633_v16 = vor.u32 %v2924_v14, %v2632_v13  ;;  %v2621_v25 = vor.u32 %v2921_v23, %v2620_v22  ;;  %v2656_v13 = vld [vmem:[%s4276_s7 + $0x198] sm:$0xf]  ;;  %v2930_v14 = vld [vmem:[%s4276_s7 + $0x1a0] sm:$0xf0]  ;;  %v2927_v23 = vld [vmem:[%s4276_s7 + $0x188] sm:$0xf0] }
 0x140   :  { %2973 = vtanh.f32 %v634_v26  ;;  %v673_v34 = vpop.f32.mrf.mxu3  ;;  %v2488_v26 = vld [vmem:[%s4276_s7 + $0x48] sm:$0xf]  ;;  %v2911_v10 = vld [vmem:[%s4276_s7 + $0x10c] sm:$0xf] }
 0x141   :  { %1184 = vmatpush.bf16.msrb.mxu1 %v2386_v29  ;;  %v674_v47 = vadd.f32 %v673_v34, %v660_v41  ;;  %1630 = vmatpush.bf16.msrb.mxu2 %v2633_v16  ;;  %v2489_v29 = vor.u32 %v2888_v27, %v2488_v26  ;;  %v2609_v34 = vor.u32 %v2918_v32, %v2608_v31  ;;  %v2929_v16 = vld [vmem:[%s4276_s7 + $0x19c] sm:$0xf] }
 0x142   :  { %v2493_v41 = vor.u32 %v2887_v37, %v2490_v38  ;;  %v2661_v18 = vor.u32 %v2929_v16, %v2658_v17  ;;  %v2645_v26 = vor.u32 %v2927_v23, %v2644_v21  ;;  %v2901_v32 = vld [vmem:[%s4276_s7 + $0xb8] sm:$0xf0]  ;;  %v2622_v38 = vld [vmem:[%s4276_s7 + $0x15c] sm:$0xf0] }
 0x143   :  { %2975 = vtanh.f32 %v674_v47  ;;  %v2889_v16 = vld [vmem:[%s4276_s7 + $0x58] sm:$0xf0]  ;;  %v2574_v21 = vld [vmem:[%s4276_s7 + $0xfc] sm:$0xf0] }
 0x145   :  { %1185 = vmatpush.bf16.msrb.mxu1 %v2374_v35  ;;  %1631 = vmatpush.bf16.msrb.mxu2 %v2621_v25  ;;  %v2476_v35 = vld [vmem:[%s4276_s7 + $0x30] sm:$0xf] }
 0x146   :  { %v2974_v40 = vpop.eup %2973  ;;  %v2477_v42 = vor.u32 %v2885_v36, %v2476_v35  ;;  %v2646_v25 = vld [vmem:[%s4276_s7 + $0x18c] sm:$0xf0]  ;;  %v2676_v35 = vld [vmem:[%s4276_s7 + $0x1b8] sm:$0xf]  ;;  %v2934_v36 = vld [vmem:[%s4276_s7 + $0x1c0] sm:$0x30] }
 0x147   :  { %v685_v45 = vpack.c.bf16 %v2974_v40, %v2972_v39  ;;  %v2596_v39 = vld [vmem:[%s4276_s7 + $0x120] sm:$0xf]  ;;  %v2915_v40 = vld [vmem:[%s4276_s7 + $0x128] sm:$0xf0] }
 0x148   :  { %v675_v51 = vpop.f32.mrf.mxu3  ;;  %v2597_v43 = vor.u32 %v2915_v40, %v2596_v39  ;;  %v2532_v39 = vld [vmem:[%s4276_s7 + $0x98] sm:$0xf]  ;;  %v2677_v40 = vor.u32 %v2934_v36, %v2676_v35  ;;  %v2925_v35 = vld [vmem:[%s4276_s7 + $0x178] sm:$0xf0] }
 0x149   :  { %1106 = vmatmul.bf16.vlgmr.msrb.gmra.mxu3 %v685_v45  ;;  %v676_v52 = vadd.f32 %v675_v51, %v662_v50  ;;  %1186 = vmatpush.bf16.msrb.mxu1 %v2362_v46  ;;  %v2976_v59 = vpop.eup %2975  ;;  %v2884_v46 = vld [vmem:[%s4276_s7 + $0x34] sm:$0xf] }
 0x14a   :  { %1632 = vmatpush.bf16.msrb.mxu2 %v2609_v34  ;;  %v2481_v50 = vor.u32 %v2884_v46, %v2478_v48  ;;  %v2912_v51 = vld [vmem:[%s4276_s7 + $0x110] sm:$0xf0]  ;;  %v2545_v34 = vor.u32 %v2901_v32, %v2544_v30  ;;  %v1614_v46 = vsel %vm93_vm0, %v2677_v40, 0  ;;  %v2917_v48 = vld [vmem:[%s4276_s7 + $0x13c] sm:$0xf] }
 0x14b   :  { %2977 = vtanh.f32 %v676_v52  ;;  %v2585_v52 = vor.u32 %v2912_v51, %v2584_v49  ;;  %v2610_v49 = vld [vmem:[%s4276_s7 + $0x144] sm:$0xf0]  ;;  %v2472_v30 = vld [vmem:[%s4276_s7 + $0x20] sm:$0xf] }
 0x14d   :  { %1187 = vmatpush.bf16.msrb.mxu1 %v2350_v53  ;;  %v2452_v53 = vld [vmem:[%s4276_s7] sm:$0xf] }
 0x14e   :  { %1633 = vmatpush.bf16.msrb.mxu2 %v2597_v43  ;;  %v2898_v43 = vld [vmem:[%s4276_s7 + $0xa0] sm:$0xf0] }
 0x151   :  { %v2978_v60 = vpop.eup %2977  ;;  %1188 = vmatpush.bf16.msrb.mxu1 %v2338_v56  ;;  %v2453_v56 = vor.u32 %v2879_v54, %v2452_v53  ;;  %v2895_v53 = vld [vmem:[%s4276_s7 + $0x88] sm:$0xf0] }
 0x152   :  { %v686_v62 = vpack.c.bf16 %v2978_v60, %v2976_v59  ;;  %1634 = vmatpush.bf16.msrb.mxu2 %v2585_v52  ;;  %v2909_v59 = vld [vmem:[%s4276_s7 + $0xf8] sm:$0xf0]  ;;  %v2469_v60 = vor.u32 %v2881_v55, %v2466_v57  ;;  %v2613_v52 = vor.u32 %v2917_v48, %v2610_v49  ;;  %v2664_v55 = vld [vmem:[%s4276_s7 + $0x1a0] sm:$0xf] }
 0x154   :  { %2447 = vmatmul.msk.bf16.vlgmr.msrb.gmra.mxu0 %vm539_vm2, %v686_v62  ;;  %2448 = vmatmul.msk.bf16.vlgmr.msra.gmra.mxu1 %vm539_vm2, %v686_v62 }
 0x155   :  { %2449 = vmatmul.msk.bf16.vlgmr.msra.gmra.mxu2 %vm539_vm2, %v686_v62  ;;  %1189 = vmatpush.bf16.msrb.mxu1 %v2326_v61  ;;  %v2573_v61 = vor.u32 %v2909_v59, %v2572_v58  ;;  %v2668_v62 = vld [vmem:[%s4276_s7 + $0x1b0] sm:$0xf] }
 0x156   :  { %1616 = vmatpush.bf16.msrb.mxu0 %v2537_v1  ;;  %v2669_v2 = vor.u32 %v2933_v63, %v2668_v62  ;;  %v2598_v62 = vld [vmem:[%s4276_s7 + $0x12c] sm:$0xf0]  ;;  %v2508_v63 = vld [vmem:[%s4276_s7 + $0x68] sm:$0xf] }
 0x157   :  { %1635 = vmatpush.bf16.msrb.mxu2 %v2573_v61  ;;  %v2914_v61 = vld [vmem:[%s4276_s7 + $0x124] sm:$0xf] }
 0x159   :  { %1176 = vmatmul.bf16.vlgmr.msra.gmra.mxu3 %v3754_v7  ;;  %v2541_v7 = vor.u32 %v2899_v4, %v2538_v6  ;;  %v2673_v4 = vor.u32 %v2932_v0, %v2670_v3  ;;  %v2454_v6 = vld [vmem:[%s4276_s7 + $0xc] sm:$0xf0]  ;;  %v2892_v3 = vld [vmem:[%s4276_s7 + $0x70] sm:$0xf0] }
 0x15a   :  { %1617 = vmatpush.bf16.msrb.mxu0 %v2525_v5  ;;  %v2878_v5 = vld [vmem:[%s4276_s7 + $0x4] sm:$0xf] }
 0x15b   :  { %1658 = vmatpush.bf16.msra.mxu1 %v2541_v7  ;;  %v1608_v7 = vsel %vm93_vm0, %v2669_v2, 0  ;;  %v2457_v8 = vor.u32 %v2878_v5, %v2454_v6  ;;  %1636 = vmatpush.bf16.msrb.mxu2 %v2561_v12  ;;  %v2601_v2 = vor.u32 %v2914_v61, %v2598_v62  ;;  %v2652_v5 = vld [vmem:[%s4276_s7 + $0x188] sm:$0xf]  ;;  %v2928_v6 = vld [vmem:[%s4276_s7 + $0x190] sm:$0xf0] }
 0x15c   :  { %1649 = vmatpush.bf16.msrb.mxu3 %v1608_v7  ;;  %v2496_v12 = vld [vmem:[%s4276_s7 + $0x50] sm:$0xf]  ;;  %v2919_v61 = vld [vmem:[%s4276_s7 + $0x148] sm:$0xf0] }
 0x15e   :  { %1618 = vmatpush.bf16.msrb.mxu0 %v2513_v11  ;;  %v1611_v11 = vsel %vm93_vm0, %v2673_v4, 0  ;;  %v2509_v4 = vor.u32 %v2892_v3, %v2508_v63 }
 0x15f   :  { %1659 = vmatpush.bf16.msra.mxu1 %v2529_v15  ;;  %v2657_v15 = vor.u32 %v2930_v14, %v2656_v13 }
 0x161   :  { %1650 = vmatpush.bf16.msrb.mxu3 %v2657_v15 }
 0x162   :  { %1619 = vmatpush.bf16.msrb.mxu0 %v2501_v20  ;;  %v2903_v20 = vld [vmem:[%s4276_s7 + $0xc8] sm:$0xf0] }
 0x163   :  { %1660 = vmatpush.bf16.msra.mxu1 %v2517_v24  ;;  %v2549_v22 = vor.u32 %v2903_v20, %v2548_v19  ;;  %v2926_v24 = vld [vmem:[%s4276_s7 + $0x184] sm:$0xf]  ;;  %v2497_v19 = vor.u32 %v2889_v16, %v2496_v12  ;;  %v2908_v20 = vld [vmem:[%s4276_s7 + $0xf4] sm:$0xf]  ;;  %v2592_v12 = vld [vmem:[%s4276_s7 + $0x110] sm:$0xf] }
 0x164   :  { %1148 = vmatmul.bf16.vlgmr.msra.gmra.mxu0 %v685_v45  ;;  %1190 = vmatmul.bf16.vlgmr.msrb.gmra.mxu1 %v685_v45  ;;  %v2882_v45 = vld [vmem:[%s4276_s7 + $0x20] sm:$0xf0]  ;;  %v2649_v27 = vor.u32 %v2926_v24, %v2646_v25 }
 0x165   :  { %v2465_v47 = vor.u32 %v2882_v45, %v2464_v44  ;;  %1637 = vmatpush.bf16.msrb.mxu2 %v2549_v22  ;;  %1651 = vmatpush.bf16.msrb.mxu3 %v2645_v26  ;;  %v4040_v44 = vld [vmem:[%s4277_s6] sm:$0x7]  ;;  %v2533_v45 = vor.u32 %v2898_v43, %v2532_v39  ;;  %v2484_v22 = vld [vmem:[%s4276_s7 + $0x38] sm:$0xf]  ;;  %v2886_v24 = vld [vmem:[%s4276_s7 + $0x40] sm:$0xf0]  ;;  %v2577_v26 = vor.u32 %v2908_v20, %v2574_v21 }
 0x166   :  { %1620 = vmatpush.bf16.msrb.mxu0 %v2489_v29  ;;  %v2634_v29 = vld [vmem:[%s4276_s7 + $0x174] sm:$0xf0]  ;;  %v765_v51 = vperm.slane %v4040_v44, 0  ;;  %v766_v32 = vperm.slane %v4040_v44, 1  ;;  %v2550_v39 = vld [vmem:[%s4276_s7 + $0xcc] sm:$0xf0] }
 0x167   :  { %1661 = vmatpush.bf16.msra.mxu1 %v2505_v33  ;;  %v2637_v31 = vor.u32 %v2923_v28, %v2634_v29  ;;  %v2905_v28 = vld [vmem:[%s4276_s7 + $0xdc] sm:$0xf]  ;;  %v2562_v29 = vld [vmem:[%s4276_s7 + $0xe4] sm:$0xf0] }
 0x168   :  { %v2565_v36 = vor.u32 %v2905_v28, %v2562_v29  ;;  %v2904_v28 = vld [vmem:[%s4276_s7 + $0xd0] sm:$0xf0] }
 0x169   :  { %1672 = vmatpush.bf16.msra.mxu3 %v2637_v31  ;;  %1700 = vmatpush.bf16.msra.mxu2 %v2545_v34  ;;  %v2883_v31 = vld [vmem:[%s4276_s7 + $0x28] sm:$0xf0]  ;;  %v2640_v34 = vld [vmem:[%s4276_s7 + $0x170] sm:$0xf] }
 0x16a   :  { %1621 = vmatpush.bf16.msrb.mxu0 %v2477_v42  ;;  %v2920_v42 = vld [vmem:[%s4276_s7 + $0x154] sm:$0xf]  ;;  %v2641_v49 = vor.u32 %v2925_v35, %v2640_v34  ;;  %v2938_v34 = vld [vmem:[%s4278_s9 + $0x18] sm:$0xff] }
 0x16b   :  { %1662 = vmatpush.bf16.msra.mxu1 %v2493_v41  ;;  %v2625_v41 = vor.u32 %v2920_v42, %v2622_v38  ;;  %v2473_v42 = vor.u32 %v2883_v31, %v2472_v30  ;;  %v2902_v38 = vld [vmem:[%s4276_s7 + $0xc4] sm:$0xf]  ;;  %v2942_v30 = vld [vmem:[%s4278_s9 + $0x38] sm:$0xff]  ;;  %v2941_v31 = vld [vmem:[%s4278_s9 + $0x30] sm:$0xff] }
 0x16c   :  { %v2950_v35 = vld [vmem:[%s4278_s9 + $0x78] sm:$0xff] }
 0x16d   :  { %1673 = vmatpush.bf16.msra.mxu3 %v2625_v41  ;;  %1701 = vmatpush.bf16.msra.mxu2 %v2533_v45  ;;  %v2880_v45 = vld [vmem:[%s4276_s7 + $0x10] sm:$0xf0] }
 0x16e   :  { %1622 = vmatpush.bf16.msrb.mxu0 %v2465_v47 }
 0x16f   :  { %1663 = vmatpush.bf16.msra.mxu1 %v2481_v50  ;;  %v2520_v50 = vld [vmem:[%s4276_s7 + $0x80] sm:$0xf] }
 0x170   :  { %v2521_v54 = vor.u32 %v2895_v53, %v2520_v50  ;;  %v2922_v53 = vld [vmem:[%s4276_s7 + $0x160] sm:$0xf0] }
 0x171   :  { %1674 = vmatpush.bf16.msra.mxu3 %v2613_v52  ;;  %v2628_v52 = vld [vmem:[%s4276_s7 + $0x158] sm:$0xf] }
 0x172   :  { %1623 = vmatpush.bf16.msrb.mxu0 %v2453_v56  ;;  %v2931_v56 = vld [vmem:[%s4276_s7 + $0x1a8] sm:$0xf0]  ;;  %1702 = vmatpush.bf16.msra.mxu2 %v2521_v54  ;;  %v2553_v54 = vor.u32 %v2902_v38, %v2550_v39 }
 0x173   :  { %1664 = vmatpush.bf16.msra.mxu1 %v2469_v60  ;;  %v2665_v59 = vor.u32 %v2931_v56, %v2664_v55  ;;  %v2936_v38 = vld [vmem:[%s4278_s9 + $0x8] sm:$0xff] }
 0x174   :  { %v2948_v39 = vld [vmem:[%s4278_s9 + $0x68] sm:$0xff] }
 0x175   :  { %1675 = vmatpush.bf16.msra.mxu3 %v2601_v2 }
 0x176   :  { %1691 = vmatpush.bf16.msra.mxu0 %v1611_v11  ;;  %v2586_v11 = vld [vmem:[%s4276_s7 + $0x114] sm:$0xf0]  ;;  %1703 = vmatpush.bf16.msra.mxu2 %v2509_v4 }
 0x177   :  { %1665 = vmatpush.bf16.msra.mxu1 %v2457_v8  ;;  %v2653_v8 = vor.u32 %v2928_v6, %v2652_v5  ;;  %v2589_v15 = vor.u32 %v2911_v10, %v2586_v11 }
 0x179   :  { %1676 = vmatpush.bf16.msra.mxu3 %v2589_v15 }
 0x17a   :  { %1692 = vmatpush.bf16.msra.mxu0 %v2661_v18  ;;  %1704 = vmatpush.bf16.msra.mxu2 %v2497_v19 }
 0x17b   :  { %1733 = vmatpush.bf16.msrb.mxu1 %v1614_v46 }
 0x17d   :  { %1677 = vmatpush.bf16.msra.mxu3 %v2577_v26 }
 0x17e   :  { %1693 = vmatpush.bf16.msra.mxu0 %v2649_v27  ;;  %v2485_v27 = vor.u32 %v2886_v24, %v2484_v22  ;;  %v2568_v24 = vld [vmem:[%s4276_s7 + $0xe0] sm:$0xf] }
 0x17f   :  { %1734 = vmatpush.bf16.msrb.mxu1 %v2665_v59 }
 0x180   :  { %1705 = vmatpush.bf16.msra.mxu2 %v2485_v27  ;;  %v2556_v27 = vld [vmem:[%s4276_s7 + $0xc8] sm:$0xf] }
 0x181   :  { %1678 = vmatpush.bf16.msra.mxu3 %v2565_v36  ;;  %v2557_v29 = vor.u32 %v2904_v28, %v2556_v27 }
 0x183   :  { %1735 = vmatpush.bf16.msrb.mxu1 %v2653_v8 }
 0x184   :  { %1706 = vmatpush.bf16.msra.mxu2 %v2473_v42  ;;  %v2949_v42 = vld [vmem:[%s4278_s9 + $0x70] sm:$0xff] }
 0x185   :  { %1679 = vmatpush.bf16.msra.mxu3 %v2553_v54  ;;  %v2952_v54 = vld [vmem:[%s4278_s9 + $0x88] sm:$0xff] }
 0x1b5   :  { %v3958_v1 = vpop.f32.mrf.mxu1 }
 0x1b6   :  { %v1094_v0 = vadd.f32 %v3958_v1, %v765_v51 }
 0x1bb   :  { %v4043_v47 = vpop.f32.mrf.mxu2 }
 0x1bc   :  { %v1136_v48 = vadd.f32 %v4043_v47, %v766_v32  ;;  %v2629_v47 = vor.u32 %v2922_v53, %v2628_v52 }
 0x1bd   :  { %v1095_v33 = vpop.f32.mrf.mxu1 }
 0x1be   :  { %v1096_v1 = vadd.f32 %v1095_v33, %v765_v51  ;;  %v767_v33 = vperm.slane %v4040_v44, 2  ;;  %v2460_v44 = vld [vmem:[%s4276_s7 + $0x8] sm:$0xf] }
 0x1bf   :  { %v2461_v56 = vor.u32 %v2880_v45, %v2460_v44  ;;  %v2946_v44 = vld [vmem:[%s4278_s9 + $0x58] sm:$0xff]  ;;  %v1295_v45 = vld [vmem:[%s4279_s8] sm:$0x7] }
 0x1c0   :  { %v1297_v52 = vperm.slane %v1295_v45, 0 }
 0x1c1   :  { %1707 = vmatpush.bf16.msra.mxu2 %v2461_v56 }
 0x1c3   :  { %v1137_v13 = vpop.f32.mrf.mxu2 }
 0x1c4   :  { %v1138_v62 = vadd.f32 %v1137_v13, %v766_v32  ;;  %v2913_v13 = vld [vmem:[%s4276_s7 + $0x118] sm:$0xf0]  ;;  %v2940_v32 = vld [vmem:[%s4278_s9 + $0x28] sm:$0xff] }
 0x1c5   :  { %v2593_v15 = vor.u32 %v2913_v13, %v2592_v12 }
 0x1cc   :  { %v1107_v37 = vpop.f32.mrf.mxu3 }
 0x1cd   :  { %v1108_v7 = vadd.f32 %v1107_v37, %v1094_v0 }
 0x1d1   :  { %v1121_v57 = vpop.f32.mrf.mxu0  ;;  %v4064_v58 = vpop.f32.mrf.mxu1 }
 0x1d2   :  { %v1122_v9 = vadd.f32 %v1121_v57, %v1108_v7 }
 0x1d4   :  { %v1109_v60 = vpop.f32.mrf.mxu3  ;;  %2979 = vtanh.f32 %v1122_v9  ;;  %v2916_v9 = vld [vmem:[%s4276_s7 + $0x130] sm:$0xf0] }
 0x1d5   :  { %v1110_v14 = vadd.f32 %v1109_v60, %v1096_v1  ;;  %v2616_v60 = vld [vmem:[%s4276_s7 + $0x140] sm:$0xf]  ;;  %v2604_v1 = vld [vmem:[%s4276_s7 + $0x128] sm:$0xf] }
 0x1d6   :  { %v2617_v7 = vor.u32 %v2919_v61, %v2616_v60  ;;  %v2605_v11 = vor.u32 %v2916_v9, %v2604_v1  ;;  %v2951_v61 = vld [vmem:[%s4278_s9 + $0x80] sm:$0xff]  ;;  %v1299_v1 = vperm.slane %v1295_v45, 2  ;;  %v1298_v9 = vperm.slane %v1295_v45, 1 }
 0x1d8   :  { %v1205_v37 = vpop.f32.mrf.mxu2 }
 0x1d9   :  { %v1123_v17 = vpop.f32.mrf.mxu0  ;;  %v4097_v18 = vpop.f32.mrf.mxu1 }
 0x1da   :  { %v1124_v23 = vadd.f32 %v1123_v17, %v1110_v14  ;;  %v2980_v40 = vpop.eup %2979  ;;  %v2580_v17 = vld [vmem:[%s4276_s7 + $0xf8] sm:$0xf] }
 0x1dc   :  { %v1177_v25 = vpop.f32.mrf.mxu3  ;;  %2981 = vtanh.f32 %v1124_v23 }
 0x1dd   :  { %v1178_v50 = vadd.f32 %v1177_v25, %v767_v33  ;;  %v2907_v25 = vld [vmem:[%s4276_s7 + $0xe8] sm:$0xf0] }
 0x1de   :  { %v2569_v26 = vor.u32 %v2907_v25, %v2568_v24 }
 0x1e0   :  { %v1207_v8 = vpop.f32.mrf.mxu2 }
 0x1e1   :  { %v1149_v41 = vpop.f32.mrf.mxu0  ;;  %v1191_v43 = vpop.f32.mrf.mxu1 }
 0x1e2   :  { %v2982_v46 = vpop.eup %2981  ;;  %v1150_v55 = vadd.f32 %v1149_v41, %v1136_v48  ;;  %v1192_v59 = vadd.f32 %v1191_v43, %v1178_v50  ;;  %v2947_v41 = vld [vmem:[%s4278_s9 + $0x60] sm:$0xff]  ;;  %v2953_v48 = vld [vmem:[%s4278_s9 + $0x90] sm:$0x30] }
 0x1e3   :  { %v4144_v51 = vpack.c.bf16 %v2982_v46, %v2980_v40  ;;  %v2935_v40 = vld [vmem:[%s4278_s9] sm:$0xff]  ;;  %v2755_v46 = vld [vmem:[%s4278_s9 + $0x90] sm:$0xf] }
 0x1e4   :  { %v1179_v57 = vpop.f32.mrf.mxu3  ;;  %v1164_v63 = vadd.f32 %v4064_v58, %v1150_v55  ;;  %v1206_v2 = vadd.f32 %v1205_v37, %v1192_v59  ;;  %v2937_v37 = vld [vmem:[%s4278_s9 + $0x10] sm:$0xff]  ;;  %v2944_v55 = vld [vmem:[%s4278_s9 + $0x48] sm:$0xff] }
 0x1e5   :  { %1624 = vmatmul.bf16.vlgmr.msrb.gmra.mxu0 %v4144_v51  ;;  %1666 = vmatmul.bf16.vlgmr.msra.gmra.mxu1 %v4144_v51  ;;  %v1180_v0 = vadd.f32 %v1179_v57, %v767_v33  ;;  %v2939_v33 = vld [vmem:[%s4278_s9 + $0x20] sm:$0xff] }
 0x1e6   :  { %1714 = vmatpush.bf16.msrb.mxu0 %v2641_v49  ;;  %2983 = vtanh.f32 %v1164_v63  ;;  %1926 = vmatpush.bf16.msra.mxu1 %v2950_v35  ;;  %v2945_v49 = vld [vmem:[%s4278_s9 + $0x50] sm:$0xff] }
 0x1e7   :  { %2985 = vtanh.f32 %v1206_v2 }
 0x1e9   :  { %v1151_v3 = vpop.f32.mrf.mxu0  ;;  %v1193_v4 = vpop.f32.mrf.mxu1 }
 0x1ea   :  { %v1152_v5 = vadd.f32 %v1151_v3, %v1138_v62  ;;  %v1194_v6 = vadd.f32 %v1193_v4, %v1180_v0  ;;  %1715 = vmatpush.bf16.msrb.mxu0 %v2629_v47  ;;  %1927 = vmatpush.bf16.msra.mxu1 %v2949_v42  ;;  %v2943_v47 = vld [vmem:[%s4278_s9 + $0x40] sm:$0xff]  ;;  %v16_v4 = vstv %s4280_s10 }
 0x1eb   :  { %17 = vst [vmem:[#allocation2] sm:$0x1] %v16_v4 }
 0x1ec   :  { %v1166_v58 = vadd.f32 %v4097_v18, %v1152_v5  ;;  %v1208_v10 = vadd.f32 %v1207_v8, %v1194_v6  ;;  %v2984_v14 = vpop.eup %2983  ;;  %v2910_v18 = vld [vmem:[%s4276_s7 + $0x100] sm:$0xf0] }
 0x1ed   :  { %v2986_v16 = vpop.eup %2985  ;;  %v2581_v23 = vor.u32 %v2910_v18, %v2580_v17 }
 0x1ee   :  { %2987 = vtanh.f32 %v1166_v58  ;;  %1716 = vmatpush.bf16.msrb.mxu0 %v2617_v7  ;;  %1928 = vmatpush.bf16.msra.mxu1 %v2948_v39 }
 0x1ef   :  { %2989 = vtanh.f32 %v1208_v10 }
 0x1f2   :  { %1717 = vmatpush.bf16.msrb.mxu0 %v2605_v11  ;;  %1929 = vmatpush.bf16.msra.mxu1 %v2947_v41 }
 0x1f4   :  { %v2988_v19 = vpop.eup %2987 }
 0x1f5   :  { %v2990_v20 = vpop.eup %2989  ;;  %v1217_v21 = vpack.c.bf16 %v2988_v19, %v2984_v14 }
 0x1f6   :  { %v1218_v22 = vpack.c.bf16 %v2990_v20, %v2986_v16  ;;  %1718 = vmatpush.bf16.msrb.mxu0 %v2593_v15  ;;  %1930 = vmatpush.bf16.msra.mxu1 %v2946_v44 }
 0x1f7   :  { %1638 = vmatmul.bf16.vlgmr.msrb.gmra.mxu2 %v1217_v21 }
 0x1f8   :  { %2678 = vmatmul.msk.bf16.vlgmr.msrb.gmra.mxu3 %vm539_vm2, %v1218_v22  ;;  %2679 = vmatmul.msk.bf16.vlgmr.msra.gmra.mxu0 %vm539_vm2, %v1218_v22 }
 0x1f9   :  { %2680 = vmatmul.msk.bf16.vlgmr.msrb.gmra.mxu1 %vm539_vm2, %v1218_v22  ;;  %1912 = vmatpush.bf16.msrb.mxu3 %v2942_v30 }
 0x1fa   :  { %1719 = vmatpush.bf16.msrb.mxu0 %v2581_v23  ;;  %1931 = vmatpush.bf16.msra.mxu1 %v2945_v49 }
 0x1fd   :  { %1913 = vmatpush.bf16.msrb.mxu3 %v2941_v31 }
 0x1fe   :  { %1720 = vmatpush.bf16.msrb.mxu0 %v2569_v26  ;;  %1932 = vmatpush.bf16.msra.mxu1 %v2944_v55 }
 0x201   :  { %1914 = vmatpush.bf16.msrb.mxu3 %v2940_v32 }
 0x202   :  { %1721 = vmatpush.bf16.msrb.mxu0 %v2557_v29  ;;  %1933 = vmatpush.bf16.msra.mxu1 %v2943_v47 }
 0x205   :  { %1915 = vmatpush.bf16.msrb.mxu3 %v2939_v33 }
 0x207   :  { %1708 = vmatmul.bf16.vlgmr.msra.gmra.mxu2 %v4144_v51  ;;  %v2756_v51 = vor.u32 %v2953_v48, %v2755_v46 }
 0x208   :  { %1680 = vmatmul.bf16.vlgmr.msra.gmra.mxu3 %v1217_v21  ;;  %1722 = vmatmul.bf16.vlgmr.msrb.gmra.mxu0 %v1217_v21 }
 0x209   :  { %1916 = vmatpush.bf16.msrb.mxu3 %v2938_v34  ;;  %v1910_v53 = vsel %vm93_vm0, %v2756_v51, 0 }
 0x20a   :  { %1945 = vmatpush.bf16.msrb.mxu2 %v1910_v53 }
 0x20d   :  { %1917 = vmatpush.bf16.msrb.mxu3 %v2937_v37 }
 0x20e   :  { %1946 = vmatpush.bf16.msrb.mxu2 %v2952_v54 }
 0x211   :  { %1918 = vmatpush.bf16.msrb.mxu3 %v2936_v38  ;;  %v2954_v38 = vld [vmem:[#allocation2] ss:$0 sm:$0xff] }
 0x212   :  { %1947 = vmatpush.bf16.msrb.mxu2 %v2951_v61 }
 0x215   :  { %1919 = vmatpush.bf16.msrb.mxu3 %v2935_v40 }
 0x262   :  { %v1625_v36 = vpop.f32.mrf.mxu0  ;;  %v1667_v56 = vpop.f32.mrf.mxu1 }
 0x263   :  { %v1626_v60 = vadd.f32 %v1625_v36, %v1297_v52  ;;  %v1668_v14 = vadd.f32 %v1667_v56, %v1298_v9 }
 0x26a   :  { %v1627_v43 = vpop.f32.mrf.mxu0  ;;  %v1669_v7 = vpop.f32.mrf.mxu1 }
 0x26b   :  { %v1628_v0 = vadd.f32 %v1627_v43, %v1297_v52  ;;  %v1670_v20 = vadd.f32 %v1669_v7, %v1298_v9 }
 0x275   :  { %v1695_v50 = vpop.f32.mrf.mxu0 }
 0x276   :  { %v1737_v15 = vpop.f32.mrf.mxu1 }
 0x27a   :  { %v1639_v57 = vpop.f32.mrf.mxu2 }
 0x27b   :  { %v1653_v59 = vpop.f32.mrf.mxu3  ;;  %v1640_v62 = vadd.f32 %v1639_v57, %v1626_v60 }
 0x27d   :  { %v1697_v63 = vpop.f32.mrf.mxu0  ;;  %v1654_v2 = vadd.f32 %v1653_v59, %v1640_v62 }
 0x27e   :  { %v1739_v29 = vpop.f32.mrf.mxu1 }
 0x27f   :  { %2991 = vtanh.f32 %v1654_v2 }
 0x282   :  { %v1641_v3 = vpop.f32.mrf.mxu2 }
 0x283   :  { %v1642_v5 = vadd.f32 %v1641_v3, %v1628_v0  ;;  %v1655_v6 = vpop.f32.mrf.mxu3 }
 0x285   :  { %v1656_v8 = vadd.f32 %v1655_v6, %v1642_v5  ;;  %v1723_v58 = vpop.f32.mrf.mxu0  ;;  %v2992_v13 = vpop.eup %2991 }
 0x287   :  { %2993 = vtanh.f32 %v1656_v8 }
 0x28a   :  { %v1709_v10 = vpop.f32.mrf.mxu2 }
 0x28b   :  { %v1681_v11 = vpop.f32.mrf.mxu3  ;;  %v1710_v12 = vadd.f32 %v1709_v10, %v1299_v1 }
 0x28c   :  { %v1682_v17 = vadd.f32 %v1681_v11, %v1668_v14 }
 0x28d   :  { %v2994_v16 = vpop.eup %2993  ;;  %v1724_v19 = vadd.f32 %v1723_v58, %v1710_v12  ;;  %v1725_v26 = vpop.f32.mrf.mxu0 }
 0x28e   :  { %v1748_v18 = vpack.c.bf16 %v2994_v16, %v2992_v13  ;;  %v1696_v21 = vadd.f32 %v1695_v50, %v1682_v17 }
 0x28f   :  { %v1738_v23 = vadd.f32 %v1737_v15, %v1724_v19 }
 0x290   :  { %1920 = vmatmul.bf16.vlgmr.msrb.gmra.mxu3 %v1748_v18  ;;  %2995 = vtanh.f32 %v1696_v21 }
 0x291   :  { %2997 = vtanh.f32 %v1738_v23 }
 0x292   :  { %v1711_v22 = vpop.f32.mrf.mxu2 }
 0x293   :  { %v1683_v24 = vpop.f32.mrf.mxu3  ;;  %v1712_v25 = vadd.f32 %v1711_v22, %v1299_v1 }
 0x294   :  { %v1684_v27 = vadd.f32 %v1683_v24, %v1670_v20 }
 0x295   :  { %v1726_v28 = vadd.f32 %v1725_v26, %v1712_v25 }
 0x296   :  { %v1698_v30 = vadd.f32 %v1697_v63, %v1684_v27  ;;  %v2996_v32 = vpop.eup %2995 }
 0x297   :  { %v1740_v31 = vadd.f32 %v1739_v29, %v1726_v28  ;;  %v2998_v33 = vpop.eup %2997 }
 0x298   :  { %2999 = vtanh.f32 %v1698_v30 }
 0x299   :  { %3001 = vtanh.f32 %v1740_v31 }
 0x29e   :  { %v3000_v34 = vpop.eup %2999 }
 0x29f   :  { %v3002_v35 = vpop.eup %3001  ;;  %v1749_v36 = vpack.c.bf16 %v3000_v34, %v2996_v32 }
 0x2a0   :  { %v1750_v37 = vpack.c.bf16 %v3002_v35, %v2998_v33 }
 0x2a1   :  { %1934 = vmatmul.bf16.vlgmr.msra.gmra.mxu1 %v1749_v36 }
 0x2a2   :  { %2757 = vmatmul.msk.bf16.vlgmr.msrb.gmra.mxu2 %vm539_vm2, %v1750_v37 }
 0x313   :  { %v1921_v42 = vpop.f32.mrf.mxu3 }
 0x314   :  { %v1922_v40 = vadd.f32 %v2954_v38, %v1921_v42 }
 0x31b   :  { %v1923_v45 = vpop.f32.mrf.mxu3 }
 0x31c   :  { %v1924_v48 = vadd.f32 %v2954_v38, %v1923_v45 }
 0x31e   :  { %v1935_v39 = vpop.f32.mrf.mxu1 }
 0x31f   :  { %v1936_v41 = vadd.f32 %v1935_v39, %v1922_v40 }
 0x325   :  { %v1949_v43 = vpop.f32.mrf.mxu2 }
 0x326   :  { %v1950_v44 = vadd.f32 %v1949_v43, %v1936_v41  ;;  %v1937_v46 = vpop.f32.mrf.mxu1 }
 0x327   :  { %v1938_v49 = vadd.f32 %v1937_v46, %v1924_v48 }
 0x328   :  { %1955 = vst.msk [vmem:[%s4281_s11] sm:$0xff] %vm1954_vm3, %v1950_v44 }
 0x32d   :  { %v1951_v50 = vpop.f32.mrf.mxu2 }
 0x32e   :  { %v1952_v51 = vadd.f32 %v1951_v50, %v1938_v49 }
 0x330   :  { %1956 = vst.msk [vmem:[%s4281_s11 + $0x8] sm:$0xff] %vm1954_vm3, %v1952_v51 }

</bundles_post_ra>
